<compile_context>
chip_gen: v7x
topology: tpu7x:2x2x1
jax: 0.10.0
libtpu: 0.0.40
codegen_flags: <defaults>
</compile_context>

<pallas_src>
import functools

import jax
import jax.numpy as jnp
from jax import lax
from jax.experimental import pallas as pl
from jax.experimental.pallas import tpu as pltpu


def _inverted_residual_kernel(x_ref, w1_ref, wdw_ref, b2_ref, w3_ref, b3_ref,
                              o_ref, *, H, W, Cin, use_res, cdt):
    """`batch_block` images per grid step, channel-major layout: lanes carry H*W."""
    HW = H * W
    Nb = x_ref.shape[0]

    # ---- hoisted per-lane edge masks (shared by all images / channels / taps) ----
    # broadcasted_iota over (1, H, W) avoids lane//W and lane%W; the (H, W) -> (HW,)
    # reshape of the contiguous minor dims is free.
    row = lax.broadcasted_iota(jnp.int32, (1, H, W), 1).reshape(1, HW)
    col = lax.broadcasted_iota(jnp.int32, (1, H, W), 2).reshape(1, HW)
    top = row >= 1
    bot = row <= H - 2
    lft = col >= 1
    rgt = col <= W - 2
    tap_mask = {
        (0, 0): top & lft, (0, 1): top, (0, 2): top & rgt,
        (1, 0): lft,                     (1, 2): rgt,
        (2, 0): bot & lft, (2, 1): bot, (2, 2): bot & rgt,
    }
    # Fold each tap mask into a 0/1 multiply (one vmul) instead of compare+and+select.
    tap_maskf = {k: v.astype(cdt) for k, v in tap_mask.items()}

    # ---- weights: read once, cast once (hoisted out of the image loop) ----
    w1 = w1_ref[...].astype(cdt)        # (hidden, Cin+1); BN1 scale+bias folded in
    w3 = w3_ref[...].astype(cdt)        # (Cout, hidden); BN3 scale folded in
    wdw = wdw_ref[...].astype(cdt)      # (9, hidden, 1); tap-major, lane-0 columns
    b2 = b2_ref[...]                    # (hidden, 1) f32
    b3 = b3_ref[...]                    # (Cout, 1)  f32

    for nb in range(Nb):                # unrolled: amortizes per-step pipeline overhead
        xa = x_ref[nb]                  # (Cin+1, HW) f32; last channel row is all ones

        # -- 1x1 expand + BN1 (scale in w1, bias via the ones row -> rides MXU) + ReLU6 --
        h = jnp.dot(w1, xa.astype(cdt), preferred_element_type=jnp.float32)
        h = jnp.clip(h, 0.0, 6.0).astype(cdt)                 # (hidden, HW)

        # -- 3x3 depthwise, stride 1, pad 1 (BN2 scale folded into wdw) --
        # Each tap: lane rotation (XLU slot, otherwise idle) * per-channel weight
        # (lane-0 column broadcast) * per-lane 0/1 edge mask. f32 accumulator.
        acc = (h * wdw[4]).astype(jnp.float32)                # center tap
        for dy in range(3):
            for dx in range(3):
                if dy == 1 and dx == 1:
                    continue
                s = (dy - 1) * W + (dx - 1)                   # flat-index offset of the tap
                shifted = pltpu.roll(h, shift=(-s) % HW, axis=1)
                k = dy * 3 + dx
                acc = acc + (shifted * wdw[k]) * tap_maskf[(dy, dx)]

        # -- BN2 bias + ReLU6 --
        d = jnp.clip(acc + b2, 0.0, 6.0).astype(cdt)          # (hidden, HW)

        # -- 1x1 project + BN3 scale (in w3) + BN3 bias --
        # b3 kept as a broadcast-add: concatenating a ones row to d to ride the MXU
        # would cost more vreg copies than the add it removes at these shapes.
        o = jnp.dot(w3, d, preferred_element_type=jnp.float32) + b3
        if use_res:                                           # stride == 1 and inp == oup
            o = o + xa[:Cin]
        o_ref[nb] = o.astype(o_ref.dtype)                     # lane-dense unmasked store


def inverted_residual(x_nchw, params, *, use_res=True, batch_block=None,
                      compute_dtype=jnp.float32):
    """Runs the inverted-residual block. x_nchw: (N, Cin, H, W) float32 (NCHW).

    compute_dtype=jnp.bfloat16 is the recommended carry on v6e/v7x (halves vreg
    footprint / roll traffic / MXU passes); keep float32 on v5e or for exactness.
    """
    N, Cin, H, W = x_nchw.shape
    hidden = params["w1"].shape[0]
    Cout = params["w3"].shape[0]
    if use_res:
        assert Cin == Cout, "use_res_connect requires inp == oup"
    HW = H * W  # lane-dense stores need HW % 128 == 0 for peak throughput (256 here)

    # Channel-major (free reshape), plus a ones channel so BN1's bias rides the MXU.
    x = x_nchw.reshape(N, Cin, HW).astype(jnp.float32)
    x = jnp.concatenate([x, jnp.ones((N, 1, HW), jnp.float32)], axis=1)   # (N, Cin+1, HW)

    # Fold BN scales into the conv weights; BN1 bias becomes w1's extra column.
    w1f = jnp.concatenate(
        [params["w1"] * params["s1"][:, None], params["b1"][:, None]], axis=1
    ).astype(jnp.float32)                                                  # (hidden, Cin+1)
    wdwf = (params["wdw"].reshape(hidden, 9) * params["s2"][:, None]).astype(jnp.float32)
    wdw9 = jnp.transpose(wdwf, (1, 0))[:, :, None]                         # (9, hidden, 1)
    w3f = (params["w3"] * params["s3"][:, None]).astype(jnp.float32)       # (Cout, hidden)
    b2 = params["b2"].reshape(hidden, 1).astype(jnp.float32)
    b3 = params["b3"].reshape(Cout, 1).astype(jnp.float32)

    # Batch several images per grid step to amortize the ~0.35 us per-step overhead,
    # keeping the per-step live f32 working set modest (h / acc / d per image).
    if batch_block is None:
        per_img_bytes = 3 * hidden * HW * 4
        batch_block = max(1, min(N, (2 << 20) // max(per_img_bytes, 1)))
    while N % batch_block:
        batch_block -= 1
    steps = N // batch_block

    kernel = functools.partial(_inverted_residual_kernel, H=H, W=W, Cin=Cin,
                               use_res=use_res, cdt=compute_dtype)

    flops = 2 * N * HW * hidden * ((Cin + 1) + Cout + 9)
    bytes_accessed = 4 * (x.size + N * Cout * HW + w1f.size + wdw9.size + w3f.size
                          + b2.size + b3.size)

    out = pl.pallas_call(
        kernel,
        out_shape=jax.ShapeDtypeStruct((N, Cout, HW), jnp.float32),
        grid_spec=pltpu.PrefetchScalarGridSpec(
            num_scalar_prefetch=0,
            grid=(steps,),
            in_specs=[
                pl.BlockSpec((batch_block, Cin + 1, HW), lambda n: (n, 0, 0)),  # x (+ones)
                pl.BlockSpec((hidden, Cin + 1), lambda n: (0, 0)),              # w1 (+b1)
                pl.BlockSpec((9, hidden, 1), lambda n: (0, 0, 0)),              # wdw tap-major
                pl.BlockSpec((hidden, 1), lambda n: (0, 0)),                    # b2
                pl.BlockSpec((Cout, hidden), lambda n: (0, 0)),                 # w3
                pl.BlockSpec((Cout, 1), lambda n: (0, 0)),                      # b3
            ],
            out_specs=pl.BlockSpec((batch_block, Cout, HW), lambda n: (n, 0, 0)),
        ),
        compiler_params=pltpu.CompilerParams(
            dimension_semantics=("parallel",),
            vmem_limit_bytes=32 * 1024 * 1024),   # explicit; safe on v7x's 64 MiB VMEM
        cost_estimate=pl.CostEstimate(
            flops=flops, transcendentals=0, bytes_accessed=bytes_accessed),
    )(x, w1f, wdw9, b2, w3f, b3)

    # (N, Cout, H*W) -> NCHW is a free reshape.
    return out.reshape(N, Cout, H, W)


def _fold_bn(gamma, beta, mean, var, eps=1e-5):
    scale = gamma / jnp.sqrt(var + eps)
    bias = beta - mean * scale
    return scale, bias


def make_params(inp, oup, expand_ratio, key):
    hidden = int(round(inp * expand_ratio))
    ks = jax.random.split(key, 6)

    # Conv weights in PyTorch channel order (out_ch first), 1x1 kernels squeezed.
    w1 = 0.1 * jax.random.normal(ks[0], (hidden, inp), jnp.float32)     # (hidden, inp, 1, 1)
    wdw = 0.1 * jax.random.normal(ks[1], (hidden, 3, 3), jnp.float32)   # (hidden, 1, 3, 3)
    w3 = 0.1 * jax.random.normal(ks[2], (oup, hidden), jnp.float32)     # (oup, hidden, 1, 1)

    def bn(k, c):
        k1, k2, k3, k4 = jax.random.split(k, 4)
        gamma = 1.0 + 0.1 * jax.random.normal(k1, (c,))
        beta = 0.1 * jax.random.normal(k2, (c,))
        mean = 0.1 * jax.random.normal(k3, (c,))
        var = 0.5 + 0.5 * jnp.abs(jax.random.normal(k4, (c,)))
        return _fold_bn(gamma, beta, mean, var)

    s1, b1 = bn(ks[3], hidden)
    s2, b2 = bn(ks[4], hidden)
    s3, b3 = bn(ks[5], oup)

    return {
        "w1": w1, "wdw": wdw, "w3": w3,
        "s1": s1.astype(jnp.float32), "b1": b1.astype(jnp.float32),
        "s2": s2.astype(jnp.float32), "b2": b2.astype(jnp.float32),
        "s3": s3.astype(jnp.float32), "b3": b3.astype(jnp.float32),
    }


def reference_forward(x_nchw, params, use_res=True):
    """Pure-JAX reference (NHWC internally, un-folded BN), mirrors PyTorch eval forward."""
    x = jnp.transpose(x_nchw, (0, 2, 3, 1)).astype(jnp.float32)   # NHWC
    N, H, W, Cin = x.shape
    h = jnp.einsum("nhwi,oi->nhwo", x, params["w1"])
    h = jnp.clip(h * params["s1"] + params["b1"], 0.0, 6.0)
    hp = jnp.pad(h, ((0, 0), (1, 1), (1, 1), (0, 0)))
    acc = jnp.zeros_like(h)
    for dy in range(3):
        for dx in range(3):
            acc = acc + hp[:, dy:dy + H, dx:dx + W, :] * params["wdw"][:, dy, dx]
    d = jnp.clip(acc * params["s2"] + params["b2"], 0.0, 6.0)
    o = jnp.einsum("nhwi,oi->nhwo", d, params["w3"])
    o = o * params["s3"] + params["b3"]
    if use_res:
        o = o + x
    return jnp.transpose(o, (0, 3, 1, 2))


if __name__ == "__main__":
    # Small shapes: batch=2, inp=oup=8, H=W=16, expand_ratio=4 -> hidden=32, stride=1.
    N, INP, OUP, H, W, EXPAND = 2, 8, 8, 16, 16, 4

    key = jax.random.PRNGKey(0)
    kx, kp = jax.random.split(key)
    x = jax.random.normal(kx, (N, INP, H, W), dtype=jnp.float32)   # NCHW like PyTorch
    params = make_params(INP, OUP, EXPAND, kp)

    ref = reference_forward(x, params, use_res=True)

    # f32 carry (exact, safe on v5e/v6e/v7x) — primary correctness check.
    out = inverted_residual(x, params, use_res=True)
    out = jax.block_until_ready(out)
    assert out.shape == (N, OUP, H, W)
    assert jnp.allclose(out, ref, rtol=1e-4, atol=1e-4), (
        float(jnp.max(jnp.abs(out - ref))))

    # bf16 carry (recommended on v6e/v7x) — smoke test with loose tolerance.
    out_bf16 = inverted_residual(x, params, use_res=True, compute_dtype=jnp.bfloat16)
    out_bf16 = jax.block_until_ready(out_bf16)
    assert jnp.allclose(out_bf16, ref, rtol=5e-2, atol=1e-1), (
        float(jnp.max(jnp.abs(out_bf16 - ref))))

    print("KERNEL_OK")
</pallas_src>

<mosaic_0001>
module attributes {stable_mosaic.version = 11 : i64} {
  func.func @_inverted_residual_kernel(%arg0: i32, %arg1: memref<2x9x256xf32, #tpu.memory_space<vmem>>, %arg2: memref<32x9xf32, #tpu.memory_space<vmem>>, %arg3: memref<9x32x1xf32, #tpu.memory_space<vmem>>, %arg4: memref<32x1xf32, #tpu.memory_space<vmem>>, %arg5: memref<8x32xf32, #tpu.memory_space<vmem>>, %arg6: memref<8x1xf32, #tpu.memory_space<vmem>>, %arg7: memref<2x8x256xf32, #tpu.memory_space<vmem>>) attributes {dimension_semantics = [#tpu.dimension_semantics<parallel>], iteration_bounds = array<i64: 1>, scalar_prefetch = 0 : i64, scratch_operands = 0 : i64, tpu.core_type = #tpu.core_type<tc>, window_params = [{transform_indices = @transform_0, window_bounds = array<i64: 2, 9, 256>}, {pipeline_mode = #tpu.pipeline_mode<synchronous>, transform_indices = @transform_1, window_bounds = array<i64: 32, 9>}, {pipeline_mode = #tpu.pipeline_mode<synchronous>, transform_indices = @transform_2, window_bounds = array<i64: 9, 32, 1>}, {pipeline_mode = #tpu.pipeline_mode<synchronous>, transform_indices = @transform_3, window_bounds = array<i64: 32, 1>}, {pipeline_mode = #tpu.pipeline_mode<synchronous>, transform_indices = @transform_4, window_bounds = array<i64: 8, 32>}, {pipeline_mode = #tpu.pipeline_mode<synchronous>, transform_indices = @transform_5, window_bounds = array<i64: 8, 1>}, {transform_indices = @transform_6, window_bounds = array<i64: 2, 8, 256>}]} {
    %0 = tpu.iota {dimensions = array<i32: 1>} : vector<1x16x16xi32>
    %1 = vector.shape_cast %0 : vector<1x16x16xi32> to vector<1x256xi32>
    %2 = tpu.iota {dimensions = array<i32: 2>} : vector<1x16x16xi32>
    %3 = vector.shape_cast %2 : vector<1x16x16xi32> to vector<1x256xi32>
    %c1_i32 = arith.constant 1 : i32
    %4 = vector.broadcast %c1_i32 : i32 to vector<1x256xi32>
    %5 = arith.cmpi sge, %1, %4 : vector<1x256xi32>
    %c14_i32 = arith.constant 14 : i32
    %6 = vector.broadcast %c14_i32 : i32 to vector<1x256xi32>
    %7 = arith.cmpi sle, %1, %6 : vector<1x256xi32>
    %c1_i32_0 = arith.constant 1 : i32
    %8 = vector.broadcast %c1_i32_0 : i32 to vector<1x256xi32>
    %9 = arith.cmpi sge, %3, %8 : vector<1x256xi32>
    %c14_i32_1 = arith.constant 14 : i32
    %10 = vector.broadcast %c14_i32_1 : i32 to vector<1x256xi32>
    %11 = arith.cmpi sle, %3, %10 : vector<1x256xi32>
    %12 = arith.andi %5, %9 : vector<1x256xi1>
    %13 = arith.andi %5, %11 : vector<1x256xi1>
    %14 = arith.andi %7, %9 : vector<1x256xi1>
    %15 = arith.andi %7, %11 : vector<1x256xi1>
    %16 = arith.extui %12 : vector<1x256xi1> to vector<1x256xi32>
    %17 = arith.sitofp %16 : vector<1x256xi32> to vector<1x256xf32>
    %18 = arith.extui %5 : vector<1x256xi1> to vector<1x256xi32>
    %19 = arith.sitofp %18 : vector<1x256xi32> to vector<1x256xf32>
    %20 = arith.extui %13 : vector<1x256xi1> to vector<1x256xi32>
    %21 = arith.sitofp %20 : vector<1x256xi32> to vector<1x256xf32>
    %22 = arith.extui %9 : vector<1x256xi1> to vector<1x256xi32>
    %23 = arith.sitofp %22 : vector<1x256xi32> to vector<1x256xf32>
    %24 = arith.extui %11 : vector<1x256xi1> to vector<1x256xi32>
    %25 = arith.sitofp %24 : vector<1x256xi32> to vector<1x256xf32>
    %26 = arith.extui %14 : vector<1x256xi1> to vector<1x256xi32>
    %27 = arith.sitofp %26 : vector<1x256xi32> to vector<1x256xf32>
    %28 = arith.extui %7 : vector<1x256xi1> to vector<1x256xi32>
    %29 = arith.sitofp %28 : vector<1x256xi32> to vector<1x256xf32>
    %30 = arith.extui %15 : vector<1x256xi1> to vector<1x256xi32>
    %31 = arith.sitofp %30 : vector<1x256xi32> to vector<1x256xf32>
    %c0 = arith.constant 0 : index
    %c0_2 = arith.constant 0 : index
    %32 = vector.load %arg2[%c0, %c0_2] : memref<32x9xf32, #tpu.memory_space<vmem>>, vector<32x9xf32>
    %c0_3 = arith.constant 0 : index
    %c0_4 = arith.constant 0 : index
    %33 = vector.load %arg5[%c0_3, %c0_4] : memref<8x32xf32, #tpu.memory_space<vmem>>, vector<8x32xf32>
    %c0_5 = arith.constant 0 : index
    %c0_6 = arith.constant 0 : index
    %c0_7 = arith.constant 0 : index
    %34 = vector.load %arg3[%c0_5, %c0_6, %c0_7] : memref<9x32x1xf32, #tpu.memory_space<vmem>>, vector<9x32x1xf32>
    %c0_8 = arith.constant 0 : index
    %c0_9 = arith.constant 0 : index
    %35 = vector.load %arg4[%c0_8, %c0_9] : memref<32x1xf32, #tpu.memory_space<vmem>>, vector<32x1xf32>
    %c0_10 = arith.constant 0 : index
    %c0_11 = arith.constant 0 : index
    %36 = vector.load %arg6[%c0_10, %c0_11] : memref<8x1xf32, #tpu.memory_space<vmem>>, vector<8x1xf32>
    %c0_12 = arith.constant 0 : index
    %c0_13 = arith.constant 0 : index
    %c0_14 = arith.constant 0 : index
    %37 = vector.load %arg1[%c0_12, %c0_13, %c0_14] : memref<2x9x256xf32, #tpu.memory_space<vmem>>, vector<1x9x256xf32>
    %38 = vector.shape_cast %37 : vector<1x9x256xf32> to vector<9x256xf32>
    %cst = arith.constant dense<0.000000e+00> : vector<32x256xf32>
    %39 = tpu.matmul %32, %38, %cst {dimension_numbers = #tpu.dot_dimension_numbers<[1], [0], [0], [1], [0, 0, 1, 1], [], []>} : vector<32x9xf32>, vector<9x256xf32>, vector<32x256xf32> -> vector<32x256xf32>
    %cst_15 = arith.constant 0.000000e+00 : f32
    %cst_16 = arith.constant 6.000000e+00 : f32
    %40 = vector.broadcast %cst_15 : f32 to vector<32x256xf32>
    %41 = arith.maximumf %40, %39 : vector<32x256xf32>
    %42 = vector.broadcast %cst_16 : f32 to vector<32x256xf32>
    %43 = arith.minimumf %42, %41 : vector<32x256xf32>
    %44 = vector.extract_strided_slice %34 {offsets = [4, 0, 0], sizes = [1, 32, 1], strides = [1, 1, 1]} : vector<9x32x1xf32> to vector<1x32x1xf32>
    %45 = vector.shape_cast %44 : vector<1x32x1xf32> to vector<32x1xf32>
    %46 = vector.broadcast %45 : vector<32x1xf32> to vector<32x256xf32>
    %47 = arith.mulf %43, %46 : vector<32x256xf32>
    %c17_i32 = arith.constant 17 : i32
    %48 = tpu.dynamic_rotate %43 by %c17_i32 dim 1 : vector<32x256xf32>, i32 -> vector<32x256xf32>
    %49 = vector.extract_strided_slice %34 {offsets = [0, 0, 0], sizes = [1, 32, 1], strides = [1, 1, 1]} : vector<9x32x1xf32> to vector<1x32x1xf32>
    %50 = vector.shape_cast %49 : vector<1x32x1xf32> to vector<32x1xf32>
    %51 = vector.broadcast %50 : vector<32x1xf32> to vector<32x256xf32>
    %52 = arith.mulf %48, %51 : vector<32x256xf32>
    %53 = vector.broadcast %17 : vector<1x256xf32> to vector<32x256xf32>
    %54 = arith.mulf %52, %53 : vector<32x256xf32>
    %55 = arith.addf %47, %54 : vector<32x256xf32>
    %c16_i32 = arith.constant 16 : i32
    %56 = tpu.dynamic_rotate %43 by %c16_i32 dim 1 : vector<32x256xf32>, i32 -> vector<32x256xf32>
    %57 = vector.extract_strided_slice %34 {offsets = [1, 0, 0], sizes = [1, 32, 1], strides = [1, 1, 1]} : vector<9x32x1xf32> to vector<1x32x1xf32>
    %58 = vector.shape_cast %57 : vector<1x32x1xf32> to vector<32x1xf32>
    %59 = vector.broadcast %58 : vector<32x1xf32> to vector<32x256xf32>
    %60 = arith.mulf %56, %59 : vector<32x256xf32>
    %61 = vector.broadcast %19 : vector<1x256xf32> to vector<32x256xf32>
    %62 = arith.mulf %60, %61 : vector<32x256xf32>
    %63 = arith.addf %55, %62 : vector<32x256xf32>
    %c15_i32 = arith.constant 15 : i32
    %64 = tpu.dynamic_rotate %43 by %c15_i32 dim 1 : vector<32x256xf32>, i32 -> vector<32x256xf32>
    %65 = vector.extract_strided_slice %34 {offsets = [2, 0, 0], sizes = [1, 32, 1], strides = [1, 1, 1]} : vector<9x32x1xf32> to vector<1x32x1xf32>
    %66 = vector.shape_cast %65 : vector<1x32x1xf32> to vector<32x1xf32>
    %67 = vector.broadcast %66 : vector<32x1xf32> to vector<32x256xf32>
    %68 = arith.mulf %64, %67 : vector<32x256xf32>
    %69 = vector.broadcast %21 : vector<1x256xf32> to vector<32x256xf32>
    %70 = arith.mulf %68, %69 : vector<32x256xf32>
    %71 = arith.addf %63, %70 : vector<32x256xf32>
    %c1_i32_17 = arith.constant 1 : i32
    %72 = tpu.dynamic_rotate %43 by %c1_i32_17 dim 1 : vector<32x256xf32>, i32 -> vector<32x256xf32>
    %73 = vector.extract_strided_slice %34 {offsets = [3, 0, 0], sizes = [1, 32, 1], strides = [1, 1, 1]} : vector<9x32x1xf32> to vector<1x32x1xf32>
    %74 = vector.shape_cast %73 : vector<1x32x1xf32> to vector<32x1xf32>
    %75 = vector.broadcast %74 : vector<32x1xf32> to vector<32x256xf32>
    %76 = arith.mulf %72, %75 : vector<32x256xf32>
    %77 = vector.broadcast %23 : vector<1x256xf32> to vector<32x256xf32>
    %78 = arith.mulf %76, %77 : vector<32x256xf32>
    %79 = arith.addf %71, %78 : vector<32x256xf32>
    %c255_i32 = arith.constant 255 : i32
    %80 = tpu.dynamic_rotate %43 by %c255_i32 dim 1 : vector<32x256xf32>, i32 -> vector<32x256xf32>
    %81 = vector.extract_strided_slice %34 {offsets = [5, 0, 0], sizes = [1, 32, 1], strides = [1, 1, 1]} : vector<9x32x1xf32> to vector<1x32x1xf32>
    %82 = vector.shape_cast %81 : vector<1x32x1xf32> to vector<32x1xf32>
    %83 = vector.broadcast %82 : vector<32x1xf32> to vector<32x256xf32>
    %84 = arith.mulf %80, %83 : vector<32x256xf32>
    %85 = vector.broadcast %25 : vector<1x256xf32> to vector<32x256xf32>
    %86 = arith.mulf %84, %85 : vector<32x256xf32>
    %87 = arith.addf %79, %86 : vector<32x256xf32>
    %c241_i32 = arith.constant 241 : i32
    %88 = tpu.dynamic_rotate %43 by %c241_i32 dim 1 : vector<32x256xf32>, i32 -> vector<32x256xf32>
    %89 = vector.extract_strided_slice %34 {offsets = [6, 0, 0], sizes = [1, 32, 1], strides = [1, 1, 1]} : vector<9x32x1xf32> to vector<1x32x1xf32>
    %90 = vector.shape_cast %89 : vector<1x32x1xf32> to vector<32x1xf32>
    %91 = vector.broadcast %90 : vector<32x1xf32> to vector<32x256xf32>
    %92 = arith.mulf %88, %91 : vector<32x256xf32>
    %93 = vector.broadcast %27 : vector<1x256xf32> to vector<32x256xf32>
    %94 = arith.mulf %92, %93 : vector<32x256xf32>
    %95 = arith.addf %87, %94 : vector<32x256xf32>
    %c240_i32 = arith.constant 240 : i32
    %96 = tpu.dynamic_rotate %43 by %c240_i32 dim 1 : vector<32x256xf32>, i32 -> vector<32x256xf32>
    %97 = vector.extract_strided_slice %34 {offsets = [7, 0, 0], sizes = [1, 32, 1], strides = [1, 1, 1]} : vector<9x32x1xf32> to vector<1x32x1xf32>
    %98 = vector.shape_cast %97 : vector<1x32x1xf32> to vector<32x1xf32>
    %99 = vector.broadcast %98 : vector<32x1xf32> to vector<32x256xf32>
    %100 = arith.mulf %96, %99 : vector<32x256xf32>
    %101 = vector.broadcast %29 : vector<1x256xf32> to vector<32x256xf32>
    %102 = arith.mulf %100, %101 : vector<32x256xf32>
    %103 = arith.addf %95, %102 : vector<32x256xf32>
    %c239_i32 = arith.constant 239 : i32
    %104 = tpu.dynamic_rotate %43 by %c239_i32 dim 1 : vector<32x256xf32>, i32 -> vector<32x256xf32>
    %105 = vector.extract_strided_slice %34 {offsets = [8, 0, 0], sizes = [1, 32, 1], strides = [1, 1, 1]} : vector<9x32x1xf32> to vector<1x32x1xf32>
    %106 = vector.shape_cast %105 : vector<1x32x1xf32> to vector<32x1xf32>
    %107 = vector.broadcast %106 : vector<32x1xf32> to vector<32x256xf32>
    %108 = arith.mulf %104, %107 : vector<32x256xf32>
    %109 = vector.broadcast %31 : vector<1x256xf32> to vector<32x256xf32>
    %110 = arith.mulf %108, %109 : vector<32x256xf32>
    %111 = arith.addf %103, %110 : vector<32x256xf32>
    %112 = vector.broadcast %35 : vector<32x1xf32> to vector<32x256xf32>
    %113 = arith.addf %111, %112 : vector<32x256xf32>
    %cst_18 = arith.constant 0.000000e+00 : f32
    %cst_19 = arith.constant 6.000000e+00 : f32
    %114 = vector.broadcast %cst_18 : f32 to vector<32x256xf32>
    %115 = arith.maximumf %114, %113 : vector<32x256xf32>
    %116 = vector.broadcast %cst_19 : f32 to vector<32x256xf32>
    %117 = arith.minimumf %116, %115 : vector<32x256xf32>
    %cst_20 = arith.constant dense<0.000000e+00> : vector<8x256xf32>
    %118 = tpu.matmul %33, %117, %cst_20 {dimension_numbers = #tpu.dot_dimension_numbers<[1], [0], [0], [1], [0, 0, 1, 1], [], []>} : vector<8x32xf32>, vector<32x256xf32>, vector<8x256xf32> -> vector<8x256xf32>
    %119 = vector.broadcast %36 : vector<8x1xf32> to vector<8x256xf32>
    %120 = arith.addf %118, %119 : vector<8x256xf32>
    %121 = vector.extract_strided_slice %38 {offsets = [0, 0], sizes = [8, 256], strides = [1, 1]} : vector<9x256xf32> to vector<8x256xf32>
    %122 = arith.addf %120, %121 : vector<8x256xf32>
    %c0_21 = arith.constant 0 : index
    %c0_22 = arith.constant 0 : index
    %c0_23 = arith.constant 0 : index
    %123 = vector.load %arg7[%c0_21, %c0_22, %c0_23] : memref<2x8x256xf32, #tpu.memory_space<vmem>>, vector<1x8x256xf32>
    %124 = vector.shape_cast %123 : vector<1x8x256xf32> to vector<8x256xf32>
    %125 = vector.shape_cast %122 : vector<8x256xf32> to vector<1x8x256xf32>
    tpu.vector_store %arg7[%c0_21, %c0_22, %c0_23], %125 {strides = array<i32>} : memref<2x8x256xf32, #tpu.memory_space<vmem>>, vector<1x8x256xf32>,
    %c1 = arith.constant 1 : index
    %c0_24 = arith.constant 0 : index
    %c0_25 = arith.constant 0 : index
    %126 = vector.load %arg1[%c1, %c0_24, %c0_25] : memref<2x9x256xf32, #tpu.memory_space<vmem>>, vector<1x9x256xf32>
    %127 = vector.shape_cast %126 : vector<1x9x256xf32> to vector<9x256xf32>
    %cst_26 = arith.constant dense<0.000000e+00> : vector<32x256xf32>
    %128 = tpu.matmul %32, %127, %cst_26 {dimension_numbers = #tpu.dot_dimension_numbers<[1], [0], [0], [1], [0, 0, 1, 1], [], []>} : vector<32x9xf32>, vector<9x256xf32>, vector<32x256xf32> -> vector<32x256xf32>
    %cst_27 = arith.constant 0.000000e+00 : f32
    %cst_28 = arith.constant 6.000000e+00 : f32
    %129 = vector.broadcast %cst_27 : f32 to vector<32x256xf32>
    %130 = arith.maximumf %129, %128 : vector<32x256xf32>
    %131 = vector.broadcast %cst_28 : f32 to vector<32x256xf32>
    %132 = arith.minimumf %131, %130 : vector<32x256xf32>
    %133 = vector.extract_strided_slice %34 {offsets = [4, 0, 0], sizes = [1, 32, 1], strides = [1, 1, 1]} : vector<9x32x1xf32> to vector<1x32x1xf32>
    %134 = vector.shape_cast %133 : vector<1x32x1xf32> to vector<32x1xf32>
    %135 = vector.broadcast %134 : vector<32x1xf32> to vector<32x256xf32>
    %136 = arith.mulf %132, %135 : vector<32x256xf32>
    %c17_i32_29 = arith.constant 17 : i32
    %137 = tpu.dynamic_rotate %132 by %c17_i32_29 dim 1 : vector<32x256xf32>, i32 -> vector<32x256xf32>
    %138 = vector.extract_strided_slice %34 {offsets = [0, 0, 0], sizes = [1, 32, 1], strides = [1, 1, 1]} : vector<9x32x1xf32> to vector<1x32x1xf32>
    %139 = vector.shape_cast %138 : vector<1x32x1xf32> to vector<32x1xf32>
    %140 = vector.broadcast %139 : vector<32x1xf32> to vector<32x256xf32>
    %141 = arith.mulf %137, %140 : vector<32x256xf32>
    %142 = vector.broadcast %17 : vector<1x256xf32> to vector<32x256xf32>
    %143 = arith.mulf %141, %142 : vector<32x256xf32>
    %144 = arith.addf %136, %143 : vector<32x256xf32>
    %c16_i32_30 = arith.constant 16 : i32
    %145 = tpu.dynamic_rotate %132 by %c16_i32_30 dim 1 : vector<32x256xf32>, i32 -> vector<32x256xf32>
    %146 = vector.extract_strided_slice %34 {offsets = [1, 0, 0], sizes = [1, 32, 1], strides = [1, 1, 1]} : vector<9x32x1xf32> to vector<1x32x1xf32>
    %147 = vector.shape_cast %146 : vector<1x32x1xf32> to vector<32x1xf32>
    %148 = vector.broadcast %147 : vector<32x1xf32> to vector<32x256xf32>
    %149 = arith.mulf %145, %148 : vector<32x256xf32>
    %150 = vector.broadcast %19 : vector<1x256xf32> to vector<32x256xf32>
    %151 = arith.mulf %149, %150 : vector<32x256xf32>
    %152 = arith.addf %144, %151 : vector<32x256xf32>
    %c15_i32_31 = arith.constant 15 : i32
    %153 = tpu.dynamic_rotate %132 by %c15_i32_31 dim 1 : vector<32x256xf32>, i32 -> vector<32x256xf32>
    %154 = vector.extract_strided_slice %34 {offsets = [2, 0, 0], sizes = [1, 32, 1], strides = [1, 1, 1]} : vector<9x32x1xf32> to vector<1x32x1xf32>
    %155 = vector.shape_cast %154 : vector<1x32x1xf32> to vector<32x1xf32>
    %156 = vector.broadcast %155 : vector<32x1xf32> to vector<32x256xf32>
    %157 = arith.mulf %153, %156 : vector<32x256xf32>
    %158 = vector.broadcast %21 : vector<1x256xf32> to vector<32x256xf32>
    %159 = arith.mulf %157, %158 : vector<32x256xf32>
    %160 = arith.addf %152, %159 : vector<32x256xf32>
    %c1_i32_32 = arith.constant 1 : i32
    %161 = tpu.dynamic_rotate %132 by %c1_i32_32 dim 1 : vector<32x256xf32>, i32 -> vector<32x256xf32>
    %162 = vector.extract_strided_slice %34 {offsets = [3, 0, 0], sizes = [1, 32, 1], strides = [1, 1, 1]} : vector<9x32x1xf32> to vector<1x32x1xf32>
    %163 = vector.shape_cast %162 : vector<1x32x1xf32> to vector<32x1xf32>
    %164 = vector.broadcast %163 : vector<32x1xf32> to vector<32x256xf32>
    %165 = arith.mulf %161, %164 : vector<32x256xf32>
    %166 = vector.broadcast %23 : vector<1x256xf32> to vector<32x256xf32>
    %167 = arith.mulf %165, %166 : vector<32x256xf32>
    %168 = arith.addf %160, %167 : vector<32x256xf32>
    %c255_i32_33 = arith.constant 255 : i32
    %169 = tpu.dynamic_rotate %132 by %c255_i32_33 dim 1 : vector<32x256xf32>, i32 -> vector<32x256xf32>
    %170 = vector.extract_strided_slice %34 {offsets = [5, 0, 0], sizes = [1, 32, 1], strides = [1, 1, 1]} : vector<9x32x1xf32> to vector<1x32x1xf32>
    %171 = vector.shape_cast %170 : vector<1x32x1xf32> to vector<32x1xf32>
    %172 = vector.broadcast %171 : vector<32x1xf32> to vector<32x256xf32>
    %173 = arith.mulf %169, %172 : vector<32x256xf32>
    %174 = vector.broadcast %25 : vector<1x256xf32> to vector<32x256xf32>
    %175 = arith.mulf %173, %174 : vector<32x256xf32>
    %176 = arith.addf %168, %175 : vector<32x256xf32>
    %c241_i32_34 = arith.constant 241 : i32
    %177 = tpu.dynamic_rotate %132 by %c241_i32_34 dim 1 : vector<32x256xf32>, i32 -> vector<32x256xf32>
    %178 = vector.extract_strided_slice %34 {offsets = [6, 0, 0], sizes = [1, 32, 1], strides = [1, 1, 1]} : vector<9x32x1xf32> to vector<1x32x1xf32>
    %179 = vector.shape_cast %178 : vector<1x32x1xf32> to vector<32x1xf32>
    %180 = vector.broadcast %179 : vector<32x1xf32> to vector<32x256xf32>
    %181 = arith.mulf %177, %180 : vector<32x256xf32>
    %182 = vector.broadcast %27 : vector<1x256xf32> to vector<32x256xf32>
    %183 = arith.mulf %181, %182 : vector<32x256xf32>
    %184 = arith.addf %176, %183 : vector<32x256xf32>
    %c240_i32_35 = arith.constant 240 : i32
    %185 = tpu.dynamic_rotate %132 by %c240_i32_35 dim 1 : vector<32x256xf32>, i32 -> vector<32x256xf32>
    %186 = vector.extract_strided_slice %34 {offsets = [7, 0, 0], sizes = [1, 32, 1], strides = [1, 1, 1]} : vector<9x32x1xf32> to vector<1x32x1xf32>
    %187 = vector.shape_cast %186 : vector<1x32x1xf32> to vector<32x1xf32>
    %188 = vector.broadcast %187 : vector<32x1xf32> to vector<32x256xf32>
    %189 = arith.mulf %185, %188 : vector<32x256xf32>
    %190 = vector.broadcast %29 : vector<1x256xf32> to vector<32x256xf32>
    %191 = arith.mulf %189, %190 : vector<32x256xf32>
    %192 = arith.addf %184, %191 : vector<32x256xf32>
    %c239_i32_36 = arith.constant 239 : i32
    %193 = tpu.dynamic_rotate %132 by %c239_i32_36 dim 1 : vector<32x256xf32>, i32 -> vector<32x256xf32>
    %194 = vector.extract_strided_slice %34 {offsets = [8, 0, 0], sizes = [1, 32, 1], strides = [1, 1, 1]} : vector<9x32x1xf32> to vector<1x32x1xf32>
    %195 = vector.shape_cast %194 : vector<1x32x1xf32> to vector<32x1xf32>
    %196 = vector.broadcast %195 : vector<32x1xf32> to vector<32x256xf32>
    %197 = arith.mulf %193, %196 : vector<32x256xf32>
    %198 = vector.broadcast %31 : vector<1x256xf32> to vector<32x256xf32>
    %199 = arith.mulf %197, %198 : vector<32x256xf32>
    %200 = arith.addf %192, %199 : vector<32x256xf32>
    %201 = vector.broadcast %35 : vector<32x1xf32> to vector<32x256xf32>
    %202 = arith.addf %200, %201 : vector<32x256xf32>
    %cst_37 = arith.constant 0.000000e+00 : f32
    %cst_38 = arith.constant 6.000000e+00 : f32
    %203 = vector.broadcast %cst_37 : f32 to vector<32x256xf32>
    %204 = arith.maximumf %203, %202 : vector<32x256xf32>
    %205 = vector.broadcast %cst_38 : f32 to vector<32x256xf32>
    %206 = arith.minimumf %205, %204 : vector<32x256xf32>
    %cst_39 = arith.constant dense<0.000000e+00> : vector<8x256xf32>
    %207 = tpu.matmul %33, %206, %cst_39 {dimension_numbers = #tpu.dot_dimension_numbers<[1], [0], [0], [1], [0, 0, 1, 1], [], []>} : vector<8x32xf32>, vector<32x256xf32>, vector<8x256xf32> -> vector<8x256xf32>
    %208 = vector.broadcast %36 : vector<8x1xf32> to vector<8x256xf32>
    %209 = arith.addf %207, %208 : vector<8x256xf32>
    %210 = vector.extract_strided_slice %127 {offsets = [0, 0], sizes = [8, 256], strides = [1, 1]} : vector<9x256xf32> to vector<8x256xf32>
    %211 = arith.addf %209, %210 : vector<8x256xf32>
    %c1_40 = arith.constant 1 : index
    %c0_41 = arith.constant 0 : index
    %c0_42 = arith.constant 0 : index
    %212 = vector.load %arg7[%c1_40, %c0_41, %c0_42] : memref<2x8x256xf32, #tpu.memory_space<vmem>>, vector<1x8x256xf32>
    %213 = vector.shape_cast %212 : vector<1x8x256xf32> to vector<8x256xf32>
    %214 = vector.shape_cast %211 : vector<8x256xf32> to vector<1x8x256xf32>
    tpu.vector_store %arg7[%c1_40, %c0_41, %c0_42], %214 {strides = array<i32>} : memref<2x8x256xf32, #tpu.memory_space<vmem>>, vector<1x8x256xf32>,
    return
  }
  func.func @transform_0(%arg0: i32) -> (i32, i32, i32) {
    %c0_i32 = arith.constant 0 : i32
    %c0_i32_0 = arith.constant 0 : i32
    %c0_i32_1 = arith.constant 0 : i32
    return %arg0, %c0_i32, %c0_i32_0 : i32, i32, i32
  }
  func.func @transform_1(%arg0: i32) -> (i32, i32) {
    %c0_i32 = arith.constant 0 : i32
    %c0_i32_0 = arith.constant 0 : i32
    %c0_i32_1 = arith.constant 0 : i32
    return %c0_i32, %c0_i32_0 : i32, i32
  }
  func.func @transform_2(%arg0: i32) -> (i32, i32, i32) {
    %c0_i32 = arith.constant 0 : i32
    %c0_i32_0 = arith.constant 0 : i32
    %c0_i32_1 = arith.constant 0 : i32
    %c0_i32_2 = arith.constant 0 : i32
    return %c0_i32, %c0_i32_0, %c0_i32_1 : i32, i32, i32
  }
  func.func @transform_3(%arg0: i32) -> (i32, i32) {
    %c0_i32 = arith.constant 0 : i32
    %c0_i32_0 = arith.constant 0 : i32
    %c0_i32_1 = arith.constant 0 : i32
    return %c0_i32, %c0_i32_0 : i32, i32
  }
  func.func @transform_4(%arg0: i32) -> (i32, i32) {
    %c0_i32 = arith.constant 0 : i32
    %c0_i32_0 = arith.constant 0 : i32
    %c0_i32_1 = arith.constant 0 : i32
    return %c0_i32, %c0_i32_0 : i32, i32
  }
  func.func @transform_5(%arg0: i32) -> (i32, i32) {
    %c0_i32 = arith.constant 0 : i32
    %c0_i32_0 = arith.constant 0 : i32
    %c0_i32_1 = arith.constant 0 : i32
    return %c0_i32, %c0_i32_0 : i32, i32
  }
  func.func @transform_6(%arg0: i32) -> (i32, i32, i32) {
    %c0_i32 = arith.constant 0 : i32
    %c0_i32_0 = arith.constant 0 : i32
    %c0_i32_1 = arith.constant 0 : i32
    return %arg0, %c0_i32, %c0_i32_0 : i32, i32, i32
  }
}

</mosaic_0001>

<bundles_post_ra>
// kernel: tpu_custom_call.1
= control target key start
LH: loop header
LB: loop body
LE: loop exit
PB: predicated region body
PF: predicated region fallthrough
CT: control target
= control target key end

     0   :  { %vm351_vm0 = vcmask 1040384   ;;  %v24_v3 = vlaneseq  ;;  %vm1962_vm1 = vmmov 1   ;;  %v3700_v5 = vmov 0  ;;  %s1967_s11 = smov 16   ;;  %s3615_s0 = inlined_call_operand.vmem [shape: f32[2,9,256], index: 0, kind: input, shape index: {}]   ;;  %s3616_s1 = inlined_call_operand.vmem [shape: f32[32,9], index: 1, kind: input, shape index: {}]   ;;  %s3617_s2 = inlined_call_operand.vmem [shape: f32[9,32,1], index: 2, kind: input, shape index: {}]   ;;  %s3618_s3 = inlined_call_operand.vmem [shape: f32[32,1], index: 3, kind: input, shape index: {}]   ;;  %s3619_s4 = inlined_call_operand.vmem [shape: f32[8,32], index: 4, kind: input, shape index: {}]   ;;  %s3620_s5 = inlined_call_operand.vmem [shape: f32[8,1], index: 5, kind: input, shape index: {}]   ;;  %s3621_s6 = inlined_call_operand.hbm [shape: f32[2,8,256], index: 6, kind: output, shape index: {}]  }
   0x1   :  { %v335_v0 = vld [vmem:[%s3615_s0 + $0x8] sm:$0xff]  ;;  %v337_v1 = vld [vmem:[%s3615_s0 + $0x18] sm:$0x1]  ;;  %v334_v2 = vld [vmem:[%s3615_s0] sm:$0xff]  ;;  %v3622_v8 = vmov 0.0   ;;  %v1964_v9 = vmov 0  }
   0x2   :  { %v1882_v4 = vpack.c.bf16 %v337_v1, %v335_v0  ;;  %vm2026_vm2 = vmpackc.low %vm351_vm0, %vm1962_vm1  ;;  %v336_v6 = vld [vmem:[%s3615_s0 + $0x10] sm:$0x1]  ;;  %422 = vmatprep.mubr.f32.mxu0 %v3622_v8  ;;  %1930 = vset.pattern.permute.xlu1 %v1964_v9  ;;  %v2037_v10 = vshrl.u32 %v24_v3, 7  ;;  %v1965_v11 = vmov 1983009808   ;;  %v288_v15 = vld [vmem:[%s3616_s1] sm:$0xff] }
   0x3   :  { %v3701_v5 = vsel %vm2026_vm2, 4294967295, %v3700_v5  ;;  %v1885_v7 = vpack.c.bf16 %v336_v6, %v334_v2  ;;  %v29_v12 = vunpack.c.l.s4 %v1965_v11  ;;  %v1966_v13 = vmov 1934713408   ;;  %1931 = vset.pattern.permute.xlu0 %v1964_v9  ;;  %1215 = vmatprep.mubr.f32.mxu1 %v3622_v8  ;;  %v289_v22 = vld [vmem:[%s3616_s1 + $0x8] sm:$0xff]  ;;  %v290_v32 = vld [vmem:[%s3616_s1 + $0x10] sm:$0xff]  ;;  %v291_v37 = vld [vmem:[%s3616_s1 + $0x18] sm:$0xff] }
   0x4   :  { %3702 = vst [vmem:[#allocation5_spill] sm:$0xff] %v3701_v5  ;;  %1884 = vmatprep.subr.msk.bf16.mxu0 %vm2026_vm2, %v1882_v4  ;;  %v44_v14 = vunpack.c.l.s4 %v1966_v13  ;;  %vm338_vm3 = vcmask 72704   ;;  %v2046_v18 = vand.u32 127, %v24_v3  ;;  %v26_v19 = vadd.s32 8, %v2037_v10 }
   0x5   :  { %1887 = vmatpush1.bf16.msk.msra.mxu0 %vm2026_vm2, %v1885_v7  ;;  %v30_v16 = vunpack.c.0.s8 %v29_v12 }
   0x6   :  { %v45_v17 = vunpack.c.0.s8 %v44_v14 }
   0x7   :  { %v33_v20 = vsub.s32 %v30_v16, %v2037_v10 }
   0x8   :  { %1866 = vmatmul.mubr.msk.f32.vlgmr.msra.gmra.mrb[0].mxu0 %vm338_vm3, %v288_v15  ;;  %v2052_v21 = vsub.s32 %v45_v17, %v2037_v10 }
   0x9   :  { %428 = vmatprep.mubr.f32.mxu0 %v3622_v8  ;;  %v34_v23 = vrot.slane %v2037_v10, %v33_v20  ;;  %v83_v24 = vrot.slane %v26_v19, %v33_v20  ;;  %v183_v25 = vrot.slane %v2046_v18, %v33_v20 }
   0xb   :  { %v2062_v26 = vrot.slane %v34_v23, %v2052_v21  ;;  %v91_v27 = vcombine.high %v83_v24, %v1964_v9  ;;  %v2066_v28 = vrot.slane %v83_v24, %v2052_v21  ;;  %v2069_v29 = vrot.slane %v183_v25, %v2052_v21 }
   0xc   :  { %1867 = vmatmul.mubr.msk.f32.gmra.mrb[2].mxu0 %vm338_vm3, %v289_v22  ;;  %v42_v33 = vcombine.high %v34_v23, %v1964_v9  ;;  %v191_v36 = vcombine.high %v183_v25, %v1964_v9 }
   0xd   :  { %434 = vmatprep.mubr.f32.mxu0 %v3622_v8  ;;  %v72_v30 = vcombine.high %v2062_v26, %v1964_v9  ;;  %v121_v31 = vcombine.high %v2066_v28, %v1964_v9  ;;  %v105_v34 = vrot.slane %v91_v27, %v2052_v21  ;;  %v221_v35 = vcombine.high %v2069_v29, %v1964_v9 }
   0xf   :  { %125 = vrot.lane.b32.xlu1 %v72_v30, %s1967_s11  ;;  %139 = vrot.lane.b32.xlu0 %v121_v31, %s1967_s11 }
  0x10   :  { %1868 = vmatmul.mubr.msk.f32.gmra.mrb[4].mxu0 %vm338_vm3, %v290_v32 }
  0x11   :  { %440 = vmatprep.mubr.f32.mxu0 %v3622_v8 }
  0x12   :  { %11 = vsyncpa [#allocation3], 0  ;;  %s1968_s14 = smov 32   ;;  %v56_v38 = vrot.slane %v42_v33, %v2052_v21  ;;  %v205_v39 = vrot.slane %v191_v36, %v2052_v21  ;;  %v76_v40 = vcombine.high %v26_v19, %v1964_v9  ;;  %v176_v41 = vcombine.high %v2046_v18, %v1964_v9  ;;  %s1969_s15 = smov 48   ;;  %v293_v51 = vld [vmem:[%s3617_s2] sm:$0xff]  ;;  %v294_v53 = vld [vmem:[%s3617_s2 + $0x8] sm:$0xff] }
  0x13   :  { %141 = vrot.lane.b32.xlu1 %v105_v34, %s1968_s14  ;;  %225 = vrot.lane.b32.xlu0 %v221_v35, %s1967_s11  ;;  %v122_v44 = vcombine.high %v105_v34, %v1964_v9  ;;  %v27_v45 = vcombine.high %v2037_v10, %v1964_v9  ;;  %s1970_s16 = smov 64   ;;  %s1971_s21 = smov 80   ;;  %v309_v61 = vld [vmem:[%s3617_s2 + $0x80] sm:$0xff]  ;;  %v310_v63 = vld [vmem:[%s3617_s2 + $0x88] sm:$0xff]  ;;  %vm153_vm4 = vcmask 130048   ;;  %vm155_vm5 = vcmask 261120  }
  0x14   :  { %1869 = vmatmul.mubr.msk.f32.gmra.mrb[6].mxu0 %vm338_vm3, %v291_v37  ;;  %v222_v42 = vcombine.high %v205_v39, %v1964_v9  ;;  %v90_v43 = vrot.slane %v76_v40, %v33_v20  ;;  %v73_v47 = vcombine.high %v56_v38, %v1964_v9  ;;  %v190_v48 = vrot.slane %v176_v41, %v33_v20  ;;  %s1972_s22 = smov 96   ;;  %v297_v0 = vld [vmem:[%s3617_s2 + $0x20] sm:$0xff]  ;;  %v298_v2 = vld [vmem:[%s3617_s2 + $0x28] sm:$0xff]  ;;  %s1973_s7 = smov 112   ;;  %v295_v7 = vld [vmem:[%s3617_s2 + $0x10] sm:$0xff] }
  0x15   :  { %1822 = vmatprep.mubr.f32.mxu0 %v3622_v8  ;;  %v41_v49 = vrot.slane %v27_v45, %v33_v20  ;;  %v296_v11 = vld [vmem:[%s3617_s2 + $0x18] sm:$0xff]  ;;  %v301_v12 = vld [vmem:[%s3617_s2 + $0x40] sm:$0xff]  ;;  %v311_v13 = vld [vmem:[%s3617_s2 + $0x90] sm:$0xff]  ;;  %s1975_s29 = smov 15   ;;  %s1976_s30 = smov 1   ;;  %vm157_vm6 = vcmask 392192  }
  0x16   :  { %v113_v46 = vrot.slane %v90_v43, %v2052_v21  ;;  %v213_v50 = vrot.slane %v190_v48, %v2052_v21  ;;  %v106_v56 = vcombine.high %v90_v43, %v1964_v9  ;;  %v206_v58 = vcombine.high %v190_v48, %v1964_v9  ;;  %v312_v14 = vld [vmem:[%s3617_s2 + $0x98] sm:$0xff]  ;;  %v299_v15 = vld [vmem:[%s3617_s2 + $0x30] sm:$0xff]  ;;  %v305_v17 = vld [vmem:[%s3617_s2 + $0x60] sm:$0xff]  ;;  %s1977_s8 = smov 127   ;;  %s1978_s9 = smov 113  }
  0x17   :  { %127 = vrot.lane.b32.xlu1 %v56_v38, %s1968_s14  ;;  %227 = vrot.lane.b32.xlu0 %v205_v39, %s1968_s14  ;;  %v64_v52 = vrot.slane %v41_v49, %v2052_v21  ;;  %v57_v62 = vcombine.high %v41_v49, %v1964_v9  ;;  %v300_v16 = vld [vmem:[%s3617_s2 + $0x38] sm:$0xff]  ;;  %v306_v19 = vld [vmem:[%s3617_s2 + $0x68] sm:$0xff]  ;;  %s1979_s10 = smov 111   ;;  %vm159_vm7 = vcmask 523264   ;;  %vm161_vm8 = vcmask 654336  }
  0x18   :  { %v123_v54 = vcombine.high %v113_v46, %v1964_v9  ;;  %v223_v55 = vcombine.high %v213_v50, %v1964_v9  ;;  %v120_v59 = vrot.slane %v106_v56, %v2052_v21  ;;  %v220_v60 = vrot.slane %v206_v58, %v2052_v21  ;;  %v303_v20 = vld [vmem:[%s3617_s2 + $0x50] sm:$0xff]  ;;  %v313_v22 = vld [vmem:[%s3617_s2 + $0xa0] sm:$0xff]  ;;  %v314_v23 = vld [vmem:[%s3617_s2 + $0xa8] sm:$0xff] }
  0x19   :  { %v74_v57 = vcombine.high %v64_v52, %v1964_v9  ;;  %v71_v1 = vrot.slane %v57_v62, %v2052_v21  ;;  %v304_v21 = vld [vmem:[%s3617_s2 + $0x58] sm:$0xff]  ;;  %v307_v24 = vld [vmem:[%s3617_s2 + $0x70] sm:$0xff]  ;;  %v317_v27 = vld [vmem:[%s3617_s2 + $0xc0] sm:$0xff]  ;;  %vm163_vm9 = vcmask 785408   ;;  %vm165_vm10 = vcmask 916480  }
  0x1a   :  { %v124_v3 = vcombine.high %v120_v59, %v1964_v9  ;;  %v224_v4 = vcombine.high %v220_v60, %v1964_v9  ;;  %v308_v25 = vld [vmem:[%s3617_s2 + $0x78] sm:$0xff]  ;;  %v318_v30 = vld [vmem:[%s3617_s2 + $0xc8] sm:$0xff]  ;;  %v315_v31 = vld [vmem:[%s3617_s2 + $0xb0] sm:$0xff] }
  0x1b   :  { %229 = vrot.lane.b32.xlu1 %v222_v42, %s1969_s15  ;;  %143 = vrot.lane.b32.xlu0 %v122_v44, %s1969_s15  ;;  %v75_v6 = vcombine.high %v71_v1, %v1964_v9  ;;  %v302_v9 = vld [vmem:[%s3617_s2 + $0x48] sm:$0xff]  ;;  %v316_v32 = vld [vmem:[%s3617_s2 + $0xb8] sm:$0xff] }
  0x1c   :  { %v321_v33 = vld [vmem:[%s3617_s2 + $0xe0] sm:$0xff]  ;;  %v322_v34 = vld [vmem:[%s3617_s2 + $0xe8] sm:$0xff]  ;;  %v319_v35 = vld [vmem:[%s3617_s2 + $0xd0] sm:$0xff] }
  0x1d   :  { %v320_v36 = vld [vmem:[%s3617_s2 + $0xd8] sm:$0xff]  ;;  %v325_v37 = vld [vmem:[%s3617_s2 + $0x100] sm:$0xff]  ;;  %v326_v38 = vld [vmem:[%s3617_s2 + $0x108] sm:$0xff] }
  0x1e   :  { %v323_v39 = vld [vmem:[%s3617_s2 + $0xf0] sm:$0xff]  ;;  %v324_v40 = vld [vmem:[%s3617_s2 + $0xf8] sm:$0xff]  ;;  %v329_v43 = vld [vmem:[%s3618_s3] sm:$0xff] }
  0x1f   :  { %145 = vrot.lane.b32.xlu1 %v113_v46, %s1970_s16  ;;  %129 = vrot.lane.b32.xlu0 %v73_v47, %s1969_s15  ;;  %v327_v41 = vld [vmem:[%s3617_s2 + $0x110] sm:$0xff]  ;;  %v328_v42 = vld [vmem:[%s3617_s2 + $0x118] sm:$0xff]  ;;  %s1974_s2 = smov 17  }
  0x20   :  { %v330_v44 = vld [vmem:[%s3618_s3 + $0x8] sm:$0xff] }
  0x23   :  { %518 = vperm.xlu1 %1930, %v293_v51   ;;  %231 = vrot.lane.b32.xlu0 %v213_v50, %s1970_s16 }
  0x27   :  { %131 = vrot.lane.b32.xlu1 %v64_v52, %s1970_s16  ;;  %523 = vperm.xlu0 %1931, %v294_v53  }
  0x2b   :  { %147 = vrot.lane.b32.xlu1 %v123_v54, %s1971_s21  ;;  %233 = vrot.lane.b32.xlu0 %v223_v55, %s1971_s21 }
  0x2f   :  { %133 = vrot.lane.b32.xlu1 %v74_v57, %s1971_s21  ;;  %149 = vrot.lane.b32.xlu0 %v120_v59, %s1972_s22 }
  0x33   :  { %235 = vrot.lane.b32.xlu1 %v220_v60, %s1972_s22  ;;  %465 = vperm.xlu0 %1931, %v309_v61  }
  0x37   :  { %470 = vperm.xlu1 %1930, %v310_v63   ;;  %595 = vperm.xlu0 %1931, %v297_v0  }
  0x3b   :  { %600 = vperm.xlu1 %1930, %v298_v2   ;;  %135 = vrot.lane.b32.xlu0 %v71_v1, %s1972_s22 }
  0x3f   :  { %151 = vrot.lane.b32.xlu1 %v124_v3, %s1973_s7  ;;  %237 = vrot.lane.b32.xlu0 %v224_v4, %s1973_s7 }
  0x43   :  { %137 = vrot.lane.b32.xlu1 %v75_v6, %s1973_s7  ;;  %528 = vperm.xlu0 %1931, %v295_v7  }
  0x47   :  { %533 = vperm.xlu1 %1930, %v296_v11   ;;  %672 = vperm.xlu0 %1931, %v301_v12  }
  0x4b   :  { %677 = vperm.xlu1 %1930, %v302_v9   ;;  %475 = vperm.xlu0 %1931, %v311_v13  }
  0x4f   :  { %480 = vperm.xlu1 %1930, %v312_v14   ;;  %605 = vperm.xlu0 %1931, %v299_v15  }
  0x53   :  { %610 = vperm.xlu1 %1930, %v300_v16   ;;  %749 = vperm.xlu0 %1931, %v305_v17  }
  0x57   :  { %754 = vperm.xlu1 %1930, %v306_v19   ;;  %682 = vperm.xlu0 %1931, %v303_v20  }
  0x5b   :  { %687 = vperm.xlu1 %1930, %v304_v21   ;;  %822 = vperm.xlu0 %1931, %v313_v22  }
  0x5f   :  { %827 = vperm.xlu1 %1930, %v314_v23   ;;  %759 = vperm.xlu0 %1931, %v307_v24  }
  0x63   :  { %764 = vperm.xlu1 %1930, %v308_v25   ;;  %895 = vperm.xlu0 %1931, %v317_v27  }
  0x67   :  { %900 = vperm.xlu1 %1930, %v318_v30   ;;  %832 = vperm.xlu0 %1931, %v315_v31  }
  0x6b   :  { %837 = vperm.xlu1 %1930, %v316_v32   ;;  %972 = vperm.xlu0 %1931, %v321_v33  }
  0x6f   :  { %977 = vperm.xlu1 %1930, %v322_v34   ;;  %905 = vperm.xlu0 %1931, %v319_v35  }
  0x73   :  { %910 = vperm.xlu1 %1930, %v320_v36   ;;  %1049 = vperm.xlu0 %1931, %v325_v37  }
  0x77   :  { %1054 = vperm.xlu1 %1930, %v326_v38   ;;  %982 = vperm.xlu0 %1931, %v323_v39  }
  0x7b   :  { %987 = vperm.xlu1 %1930, %v324_v40   ;;  %1059 = vperm.xlu0 %1931, %v327_v41  }
  0x7f   :  { %1064 = vperm.xlu1 %1930, %v328_v42   ;;  %1101 = vperm.xlu0 %1931, %v329_v43  }
  0x81   :  { %v2236_v45 = vpop.permute.xlu1 %125  ;;  %v2238_v46 = vpop.permute.xlu0 %139 }
  0x83   :  { %1106 = vperm.xlu1 %1930, %v330_v44  }
  0x85   :  { %v2240_v47 = vpop.permute.xlu1 %141  ;;  %v2242_v48 = vpop.permute.xlu0 %225 }
  0x89   :  { %v2244_v49 = vpop.permute.xlu1 %127  ;;  %v2246_v50 = vpop.permute.xlu0 %227 }
  0x8d   :  { %v2248_v51 = vpop.permute.xlu1 %229  ;;  %v2250_v52 = vpop.permute.xlu0 %143 }
  0x91   :  { %v2252_v53 = vpop.permute.xlu1 %145  ;;  %v2254_v54 = vpop.permute.xlu0 %129 }
  0x95   :  { %v2258_v56 = vpop.permute.xlu0 %231 }
  0xa2   :  { %v2256_v55 = vpop.permute.xlu1 %518 }
  0xa3   :  { %3703 = vst [vmem:[#allocation6_spill] sm:$0xff] %v2256_v55 }
  0xa6   :  { %v2260_v57 = vpop.permute.xlu1 %131  ;;  %v2262_v58 = vpop.permute.xlu0 %523 }
  0xaa   :  { %v2264_v59 = vpop.permute.xlu1 %147  ;;  %v2266_v60 = vpop.permute.xlu0 %233 }
  0xae   :  { %v2268_v61 = vpop.permute.xlu1 %133  ;;  %v2270_v62 = vpop.permute.xlu0 %149 }
  0xb2   :  { %v2272_v63 = vpop.permute.xlu1 %235  ;;  %v2274_v1 = vpop.permute.xlu0 %465 }
  0xb3   :  { %3704 = vst [vmem:[#allocation7_spill] sm:$0xff] %v2274_v1 }
  0xb6   :  { %v2278_v7 = vpop.permute.xlu1 %470  ;;  %v2282_v9 = vpop.permute.xlu0 %595 }
  0xb7   :  { %3705 = vst [vmem:[#allocation8_spill] sm:$0xff] %v2278_v7 }
  0xba   :  { %v2292_v16 = vpop.permute.xlu1 %600  ;;  %v2294_v17 = vpop.permute.xlu0 %135 }
  0xbb   :  { %3706 = vst [vmem:[#allocation9_spill] sm:$0xff] %v2292_v16 }
  0xbe   :  { %v2302_v21 = vpop.permute.xlu1 %151  ;;  %v2308_v22 = vpop.permute.xlu0 %237 }
  0xc2   :  { %v2314_v23 = vpop.permute.xlu1 %137  ;;  %v2316_v24 = vpop.permute.xlu0 %528 }
  0xc3   :  { %3707 = vst [vmem:[#allocation10_spill] sm:$0xff] %v2316_v24 }
  0xc6   :  { %v2322_v25 = vpop.permute.xlu1 %533  ;;  %v2328_v27 = vpop.permute.xlu0 %672 }
  0xc7   :  { %3708 = vst [vmem:[#allocation11_spill] sm:$0xff] %v2322_v25  ;;  %3709 = vst [vmem:[#allocation12_spill] sm:$0xff] %v2328_v27 }
  0xca   :  { %v2334_v31 = vpop.permute.xlu1 %677  ;;  %v2338_v34 = vpop.permute.xlu0 %475 }
  0xcb   :  { %3710 = vst [vmem:[#allocation13_spill] sm:$0xff] %v2338_v34 }
  0xce   :  { %v2346_v36 = vpop.permute.xlu1 %480  ;;  %v2352_v37 = vpop.permute.xlu0 %605 }
  0xcf   :  { %3711 = vst [vmem:[#allocation14_spill] sm:$0xff] %v2346_v36  ;;  %3712 = vst [vmem:[#allocation15_spill] sm:$0xff] %v2352_v37 }
  0xd2   :  { %v2358_v38 = vpop.permute.xlu1 %610  ;;  %v2360_v39 = vpop.permute.xlu0 %749 }
  0xd3   :  { %3713 = vst [vmem:[#allocation16_spill] sm:$0xff] %v2358_v38 }
  0xd6   :  { %v2366_v40 = vpop.permute.xlu1 %754  ;;  %v2372_v41 = vpop.permute.xlu0 %682 }
  0xd7   :  { %3714 = vst [vmem:[#allocation17_spill] sm:$0xff] %v2366_v40  ;;  %3715 = vst [vmem:[#allocation18_spill] sm:$0xff] %v2372_v41 }
  0xda   :  { %v2378_v42 = vpop.permute.xlu1 %687  ;;  %v2380_v43 = vpop.permute.xlu0 %822 }
  0xdb   :  { %v424_v0 = vpop.f32.mrb[0].mxu0  ;;  %3716 = vst [vmem:[#allocation19_spill] sm:$0xff] %v2378_v42 }
  0xdc   :  { %v447_v2 = vmax.f32 %v424_v0, 0.0  ;;  %v426_v3 = vpop.f32.mrb[1].mxu0 }
  0xdd   :  { %v448_v30 = vmax.f32 %v426_v3, 0.0 }
  0xde   :  { %v2276_v4 = vmin.f32 %v447_v2, 6.0  ;;  %v2386_v0 = vpop.permute.xlu1 %827  ;;  %v2392_v2 = vpop.permute.xlu0 %759 }
  0xdf   :  { %v430_v6 = vpop.f32.mrb[2].mxu0  ;;  %v2336_v32 = vmin.f32 %v448_v30, 6.0  ;;  %3717 = vst [vmem:[#allocation20_spill] sm:$0xff] %v2386_v0  ;;  %3718 = vst [vmem:[#allocation21_spill] sm:$0xff] %v2392_v2  ;;  %v239_v2 = vsel %vm153_vm4, %v2069_v29, %v2242_v48 }
  0xe0   :  { %v449_v11 = vmax.f32 %v430_v6, 0.0  ;;  %v432_v12 = vpop.f32.mrb[3].mxu0  ;;  %491 = vrot.lane.b32.xlu0 %v2276_v4, %s1974_s2  ;;  %v240_v41 = vsel %vm155_vm5, %v239_v2, %v2246_v50 }
  0xe1   :  { %v450_v33 = vmax.f32 %v432_v12, 0.0 }
  0xe2   :  { %v2284_v13 = vmin.f32 %v449_v11, 6.0  ;;  %v2400_v11 = vpop.permute.xlu1 %764 }
  0xe3   :  { %v436_v14 = vpop.f32.mrb[4].mxu0  ;;  %v2344_v35 = vmin.f32 %v450_v33, 6.0  ;;  %3720 = vst [vmem:[#allocation23_spill] sm:$0xff] %v2400_v11 }
  0xe4   :  { %568 = vrot.lane.b32.xlu0 %v2276_v4, %s1967_s11  ;;  %493 = vrot.lane.b32.xlu1 %v2284_v13, %s1974_s2  ;;  %v2290_v15 = vpop.f32.mrb[5].mxu0  ;;  %v451_v44 = vmax.f32 %v436_v14, 0.0  ;;  %v2404_v14 = vpop.permute.xlu0 %895 }
  0xe5   :  { %3722 = vst [vmem:[#allocation25_spill] sm:$0xff] %v2404_v14  ;;  %v452_v5 = vmax.f32 %v2290_v15, 0.0 }
  0xe6   :  { %v2394_v3 = vmin.f32 %v451_v44, 6.0  ;;  %v2410_v30 = vpop.permute.xlu1 %900 }
  0xe7   :  { %v442_v19 = vpop.f32.mrb[6].mxu0  ;;  %3723 = vst [vmem:[#allocation26_spill] sm:$0xff] %v2410_v30  ;;  %v2445_v11 = vmin.f32 %v452_v5, 6.0 }
  0xe8   :  { %645 = vrot.lane.b32.xlu0 %v2276_v4, %s1975_s29  ;;  %570 = vrot.lane.b32.xlu1 %v2284_v13, %s1967_s11  ;;  %v2300_v20 = vpop.f32.mrb[7].mxu0  ;;  %3719 = vst [vmem:[#allocation22_spill] sm:$0xff] %v2394_v3  ;;  %v453_v6 = vmax.f32 %v442_v19, 0.0  ;;  %v2416_v19 = vpop.permute.xlu0 %832 }
  0xe9   :  { %3724 = vst [vmem:[#allocation27_spill] sm:$0xff] %v2416_v19  ;;  %3730 = vst [vmem:[#allocation33_spill] sm:$0xff] %v2445_v11  ;;  %v454_v19 = vmax.f32 %v2300_v20, 0.0 }
  0xea   :  { %v2402_v12 = vmin.f32 %v453_v6, 6.0  ;;  %v2422_v33 = vpop.permute.xlu1 %837 }
  0xeb   :  { %3725 = vst [vmem:[#allocation28_spill] sm:$0xff] %v2422_v33  ;;  %v2454_v15 = vmin.f32 %v454_v19, 6.0 }
  0xec   :  { %722 = vrot.lane.b32.xlu0 %v2276_v4, %s1976_s30  ;;  %647 = vrot.lane.b32.xlu1 %v2284_v13, %s1975_s29  ;;  %3721 = vst [vmem:[#allocation24_spill] sm:$0xff] %v2402_v12  ;;  %v2424_v44 = vpop.permute.xlu0 %972 }
  0xed   :  { %3726 = vst [vmem:[#allocation29_spill] sm:$0xff] %v2424_v44  ;;  %3732 = vst [vmem:[#allocation35_spill] sm:$0xff] %v2454_v15 }
  0xee   :  { %v2430_v6 = vpop.permute.xlu1 %977 }
  0xef   :  { %3727 = vst [vmem:[#allocation30_spill] sm:$0xff] %v2430_v6 }
  0xf0   :  { %795 = vrot.lane.b32.xlu0 %v2276_v4, %s1977_s8  ;;  %724 = vrot.lane.b32.xlu1 %v2284_v13, %s1976_s30  ;;  %v2436_v8 = vpop.permute.xlu0 %905 }
  0xf1   :  { %3728 = vst [vmem:[#allocation31_spill] sm:$0xff] %v2436_v8 }
  0xf2   :  { %v2443_v33 = vpop.permute.xlu1 %910 }
  0xf3   :  { %3729 = vst [vmem:[#allocation32_spill] sm:$0xff] %v2443_v33 }
  0xf4   :  { %868 = vrot.lane.b32.xlu0 %v2276_v4, %s1978_s9  ;;  %797 = vrot.lane.b32.xlu1 %v2284_v13, %s1977_s8  ;;  %v2448_v42 = vpop.permute.xlu0 %1049 }
  0xf5   :  { %3731 = vst [vmem:[#allocation34_spill] sm:$0xff] %v2448_v42 }
  0xf6   :  { %v2456_v8 = vpop.permute.xlu1 %1054 }
  0xf7   :  { %3733 = vst [vmem:[#allocation36_spill] sm:$0xff] %v2456_v8 }
  0xf8   :  { %945 = vrot.lane.b32.xlu0 %v2276_v4, %s1973_s7  ;;  %870 = vrot.lane.b32.xlu1 %v2284_v13, %s1978_s9  ;;  %v2462_v5 = vpop.permute.xlu0 %982 }
  0xf9   :  { %3734 = vst [vmem:[#allocation37_spill] sm:$0xff] %v2462_v5 }
  0xfa   :  { %v2468_v20 = vpop.permute.xlu1 %987 }
  0xfb   :  { %3735 = vst [vmem:[#allocation38_spill] sm:$0xff] %v2468_v20  ;;  %v167_v20 = vsel %vm153_vm4, %v2066_v28, %v2238_v46  ;;  %v154_v28 = vsel %vm153_vm4, %v2062_v26, %v2236_v45  ;;  %v241_v26 = vsel %vm157_vm6, %v240_v41, %v2248_v51 }
  0xfc   :  { %1022 = vrot.lane.b32.xlu0 %v2276_v4, %s1979_s10  ;;  %947 = vrot.lane.b32.xlu1 %v2284_v13, %s1973_s7  ;;  %v2470_v19 = vpop.permute.xlu0 %1059  ;;  %v168_v38 = vsel %vm155_vm5, %v167_v20, %v2240_v47  ;;  %v156_v47 = vsel %vm155_vm5, %v154_v28, %v2244_v49  ;;  %v331_v49 = vld [vmem:[%s3618_s3 + $0x10] sm:$0xff]  ;;  %v332_v20 = vld [vmem:[%s3618_s3 + $0x18] sm:$0xff] }
  0xfd   :  { %3736 = vst [vmem:[#allocation39_spill] sm:$0xff] %v2470_v19  ;;  %v169_v29 = vsel %vm157_vm6, %v168_v38, %v2250_v52  ;;  %v158_v52 = vsel %vm157_vm6, %v156_v47, %v2254_v54  ;;  %v242_v38 = vsel %vm159_vm7, %v241_v26, %v2258_v56 }
  0xfe   :  { %v2476_v33 = vpop.permute.xlu1 %1064  ;;  %v170_v50 = vsel %vm159_vm7, %v169_v29, %v2252_v53  ;;  %v160_v54 = vsel %vm159_vm7, %v158_v52, %v2260_v57  ;;  %v243_v2 = vsel %vm161_vm8, %v242_v38, %v2266_v60  ;;  %v2576_v38 = vsub.s32 0, %v2037_v10 }
  0xff   :  { %3737 = vst [vmem:[#allocation40_spill] sm:$0xff] %v2476_v33  ;;  %v171_v51 = vsel %vm161_vm8, %v170_v50, %v2264_v59  ;;  %v162_v59 = vsel %vm161_vm8, %v160_v54, %v2268_v61  ;;  %v244_v57 = vsel %vm163_vm9, %v243_v2, %v2272_v63 }
 0x100   :  { %499 = vrot.lane.b32.xlu0 %v2336_v32, %s1974_s2  ;;  %1024 = vrot.lane.b32.xlu1 %v2284_v13, %s1979_s10  ;;  %v2482_v5 = vpop.permute.xlu0 %1101  ;;  %v172_v56 = vsel %vm163_vm9, %v171_v51, %v2270_v62  ;;  %v164_v47 = vsel %vm163_vm9, %v162_v59, %v2294_v17  ;;  %v245_v62 = vsel %vm165_vm10, %v244_v57, %v2308_v22  ;;  %v3742_v22 = vmov 0.0  }
 0x101   :  { %3738 = vst [vmem:[#allocation41_spill] sm:$0xff] %v2482_v5  ;;  %v173_v60 = vsel %vm165_vm10, %v172_v56, %v2302_v21  ;;  %v166_v61 = vsel %vm165_vm10, %v164_v47, %v2314_v23  ;;  %vm250_vm13 = vcmp.ge.s32.totalorder %v245_v62, 1  ;;  %vm251_vm14 = vcmp.le.s32.totalorder %v245_v62, 14 }
 0x102   :  { %v2490_v19 = vpop.permute.xlu1 %1106  ;;  %vm247_vm11 = vcmp.ge.s32.totalorder %v173_v60, 1  ;;  %vm249_vm12 = vcmp.le.s32.totalorder %v173_v60, 14  ;;  %vm246_vm0 = vcmp.ge.s32.totalorder %v166_v61, 1  ;;  %v1856_v2 = vsel %vm250_vm13, 1.0, %v3742_v22 }
 0x103   :  { %3739 = vst [vmem:[#allocation42_spill] sm:$0xff] %v2490_v19  ;;  %vm253_vm15 = vmand %vm247_vm11, %vm250_vm13  ;;  %v1853_v52 = vsel %vm247_vm11, 1.0, %v3742_v22  ;;  %v1857_v56 = vsel %vm251_vm14, 1.0, %v3742_v22  ;;  %vm248_vm8 = vcmp.le.s32.totalorder %v166_v61, 14  ;;  %v1852_v47 = vsel %vm246_vm0, 1.0, %v3742_v22 }
 0x104   :  { %576 = vrot.lane.b32.xlu0 %v2336_v32, %s1967_s11  ;;  %501 = vrot.lane.b32.xlu1 %v2344_v35, %s1974_s2  ;;  %vm2565_vm1 = vmand %vm247_vm11, %vm251_vm14  ;;  %v1851_v54 = vsel %vm253_vm15, 1.0, %v3742_v22  ;;  %v2596_v59 = vrot.slane %v1853_v52, %v2576_v38  ;;  %vm507_vm10 = vcmp.lt.s32.totalorder %v2046_v18, 17  ;;  %v2617_v17 = vrot.slane %v1856_v2, %v2576_v38 }
 0x105   :  { %vm2571_vm4 = vmand %vm249_vm12, %vm250_vm13  ;;  %v1855_v57 = vsel %vm2565_vm1, 1.0, %v3742_v22  ;;  %v1860_v25 = vsel %vm248_vm8, 1.0, %v3742_v22  ;;  %vm738_vm15 = vcmp.lt.s32.totalorder %v2046_v18, 1  ;;  %vm884_vm1 = vcmp.lt.s32.totalorder %v2046_v18, 113 }
 0x106   :  { %vm2580_vm6 = vmand %vm249_vm12, %vm251_vm14  ;;  %v2635_v2 = vrot.slane %v1855_v57, %v2576_v38 }
 0x107   :  { %vm252_vm7 = vmand %vm246_vm0, %vm250_vm13 }
 0x108   :  { %653 = vrot.lane.b32.xlu0 %v2336_v32, %s1975_s29  ;;  %578 = vrot.lane.b32.xlu1 %v2344_v35, %s1967_s11  ;;  %vm254_vm9 = vmand %vm246_vm0, %vm251_vm14  ;;  %v1850_v52 = vsel %vm252_vm7, 1.0, %v3742_v22  ;;  %vm811_vm0 = vcmp.lt.s32.totalorder %v2046_v18, 127 }
 0x109   :  { %vm2626_vm11 = vmand %vm248_vm8, %vm250_vm13  ;;  %v2654_v24 = vrot.slane %v1850_v52, %v2576_v38  ;;  %vm584_vm13 = vcmp.lt.s32.totalorder %v2046_v18, 16 }
 0x10a   :  { %v2665_v61 = vsel %vm2626_vm11, 1.0, %v3742_v22 }
 0x10c   :  { %730 = vrot.lane.b32.xlu0 %v2336_v32, %s1976_s30  ;;  %655 = vrot.lane.b32.xlu1 %v2344_v35, %s1975_s29 }
 0x110   :  { %803 = vrot.lane.b32.xlu0 %v2336_v32, %s1977_s8  ;;  %732 = vrot.lane.b32.xlu1 %v2344_v35, %s1976_s30 }
 0x114   :  { %876 = vrot.lane.b32.xlu0 %v2336_v32, %s1978_s9  ;;  %805 = vrot.lane.b32.xlu1 %v2344_v35, %s1977_s8 }
 0x118   :  { %953 = vrot.lane.b32.xlu0 %v2336_v32, %s1973_s7  ;;  %878 = vrot.lane.b32.xlu1 %v2344_v35, %s1978_s9 }
 0x11c   :  { %1030 = vrot.lane.b32.xlu0 %v2336_v32, %s1979_s10  ;;  %955 = vrot.lane.b32.xlu1 %v2344_v35, %s1973_s7 }
 0x120   :  { %495 = vrot.lane.b32.xlu0 %v2394_v3, %s1974_s2  ;;  %1032 = vrot.lane.b32.xlu1 %v2344_v35, %s1979_s10 }
 0x124   :  { %572 = vrot.lane.b32.xlu0 %v2394_v3, %s1967_s11  ;;  %497 = vrot.lane.b32.xlu1 %v2402_v12, %s1974_s2 }
 0x128   :  { %649 = vrot.lane.b32.xlu0 %v2394_v3, %s1975_s29  ;;  %574 = vrot.lane.b32.xlu1 %v2402_v12, %s1967_s11 }
 0x12c   :  { %726 = vrot.lane.b32.xlu0 %v2394_v3, %s1976_s30  ;;  %651 = vrot.lane.b32.xlu1 %v2402_v12, %s1975_s29 }
 0x130   :  { %799 = vrot.lane.b32.xlu0 %v2394_v3, %s1977_s8  ;;  %728 = vrot.lane.b32.xlu1 %v2402_v12, %s1976_s30 }
 0x134   :  { %872 = vrot.lane.b32.xlu0 %v2394_v3, %s1978_s9  ;;  %801 = vrot.lane.b32.xlu1 %v2402_v12, %s1977_s8 }
 0x138   :  { %949 = vrot.lane.b32.xlu0 %v2394_v3, %s1973_s7  ;;  %874 = vrot.lane.b32.xlu1 %v2402_v12, %s1978_s9 }
 0x13c   :  { %503 = vrot.lane.b32.xlu0 %v2445_v11, %s1974_s2  ;;  %951 = vrot.lane.b32.xlu1 %v2402_v12, %s1973_s7 }
 0x140   :  { %580 = vrot.lane.b32.xlu0 %v2445_v11, %s1967_s11  ;;  %505 = vrot.lane.b32.xlu1 %v2454_v15, %s1974_s2 }
 0x144   :  { %657 = vrot.lane.b32.xlu0 %v2445_v11, %s1975_s29  ;;  %582 = vrot.lane.b32.xlu1 %v2454_v15, %s1967_s11 }
 0x148   :  { %734 = vrot.lane.b32.xlu0 %v2445_v11, %s1976_s30  ;;  %659 = vrot.lane.b32.xlu1 %v2454_v15, %s1975_s29 }
 0x14c   :  { %807 = vrot.lane.b32.xlu0 %v2445_v11, %s1977_s8  ;;  %736 = vrot.lane.b32.xlu1 %v2454_v15, %s1976_s30 }
 0x150   :  { %880 = vrot.lane.b32.xlu0 %v2445_v11, %s1978_s9  ;;  %809 = vrot.lane.b32.xlu1 %v2454_v15, %s1977_s8 }
 0x152   :  { %v2492_v33 = vpop.permute.xlu0 %491 }
 0x154   :  { %957 = vrot.lane.b32.xlu0 %v2445_v11, %s1973_s7  ;;  %882 = vrot.lane.b32.xlu1 %v2454_v15, %s1978_s9 }
 0x156   :  { %v2504_v46 = vpop.permute.xlu0 %568  ;;  %v2506_v36 = vpop.permute.xlu1 %493 }
 0x158   :  { %1026 = vrot.lane.b32.xlu0 %v2394_v3, %s1979_s10  ;;  %959 = vrot.lane.b32.xlu1 %v2454_v15, %s1973_s7  ;;  %v2640_v3 = vrot.slane %v1852_v47, %v2576_v38 }
 0x15a   :  { %v2518_v45 = vpop.permute.xlu0 %645  ;;  %v2520_v48 = vpop.permute.xlu1 %570 }
 0x15c   :  { %1034 = vrot.lane.b32.xlu0 %v2445_v11, %s1979_s10  ;;  %1028 = vrot.lane.b32.xlu1 %v2402_v12, %s1979_s10  ;;  %v2614_v12 = vrot.slane %v1851_v54, %v2576_v38  ;;  %v1854_v11 = vsel %vm254_vm9, 1.0, %v3742_v22  ;;  %v1863_v54 = vsel %vm2580_vm6, 1.0, %v3742_v22  ;;  %vm1038_vm6 = vcmp.lt.s32.totalorder %v2046_v18, 111 }
 0x15d   :  { %v2668_v19 = vrot.slane %v1854_v11, %v2576_v38 }
 0x15e   :  { %v2533_v41 = vpop.permute.xlu0 %722  ;;  %v2535_v53 = vpop.permute.xlu1 %647 }
 0x160   :  { %1111 = vperm.xlu0 %1931, %v331_v49   ;;  %1036 = vrot.lane.b32.xlu1 %v2454_v15, %s1979_s10  ;;  %v1861_v49 = vsel %vm249_vm12, 1.0, %v3742_v22  ;;  %v1859_v15 = vsel %vm2571_vm4, 1.0, %v3742_v22  ;;  %vm258_vm12 = vmand %vm248_vm8, %vm251_vm14  ;;  %vm661_vm14 = vcmp.lt.s32.totalorder %v2046_v18, 15  ;;  %vm961_vm4 = vcmp.lt.s32.totalorder %v2046_v18, 112 }
 0x161   :  { %v2604_v60 = vrot.slane %v1861_v49, %v2576_v38  ;;  %v2620_v49 = vrot.slane %v1857_v56, %v2576_v38  ;;  %v2645_v37 = vrot.slane %v1859_v15, %v2576_v38  ;;  %v2660_v15 = vrot.slane %v1860_v25, %v2576_v38 }
 0x162   :  { %v2546_v28 = vpop.permute.xlu0 %795  ;;  %v2548_v29 = vpop.permute.xlu1 %724  ;;  %v2674_v52 = vsel %vm258_vm12, 1.0, %v3742_v22 }
 0x164   :  { %1116 = vperm.xlu1 %1930, %v332_v20  }
 0x166   :  { %v2554_v26 = vpop.permute.xlu0 %868  ;;  %v2556_v50 = vpop.permute.xlu1 %797 }
 0x16a   :  { %v2560_v63 = vpop.permute.xlu0 %945  ;;  %v2562_v21 = vpop.permute.xlu1 %870 }
 0x16e   :  { %v2591_v10 = vpop.permute.xlu0 %1022  ;;  %v2593_v20 = vpop.permute.xlu1 %947 }
 0x172   :  { %v500_v56 = vpop.permute.xlu0 %499  ;;  %v2637_v34 = vpop.permute.xlu1 %1024 }
 0x173   :  { %v508_v51 = vsel %vm507_vm10, %v2492_v33, %v500_v56  ;;  %v512_v57 = vsel %vm507_vm10, %v500_v56, %v2492_v33  ;;  %v2671_v33 = vrot.slane %v1863_v54, %v2576_v38  ;;  %v483_v56 = vmul.f32 %v2274_v1, %v2276_v4 }
 0x174   :  { %v536_v47 = vmul.f32 %v2256_v55, %v512_v57  ;;  %v537_v62 = vmul.f32 %v2256_v55, %v508_v51 }
 0x176   :  { %v552_v25 = vmul.f32 %v2654_v24, %v536_v47  ;;  %v553_v51 = vmul.f32 %v2614_v12, %v537_v62  ;;  %v577_v57 = vpop.permute.xlu0 %576  ;;  %v502_v23 = vpop.permute.xlu1 %501  ;;  %v484_v47 = vmul.f32 %v2274_v1, %v2336_v32 }
 0x177   :  { %v585_v11 = vsel %vm584_vm13, %v2504_v46, %v577_v57  ;;  %v589_v54 = vsel %vm584_vm13, %v577_v57, %v2504_v46  ;;  %v509_v55 = vsel %vm507_vm10, %v2506_v36, %v502_v23  ;;  %v513_v4 = vsel %vm507_vm10, %v502_v23, %v2506_v36 }
 0x178   :  { %v613_v62 = vmul.f32 %v2282_v9, %v589_v54  ;;  %v614_v22 = vmul.f32 %v2282_v9, %v585_v11  ;;  %v485_v46 = vmul.f32 %v2278_v7, %v2284_v13  ;;  %v486_v57 = vmul.f32 %v2278_v7, %v2344_v35 }
 0x179   :  { %v538_v5 = vmul.f32 %v2262_v58, %v513_v4  ;;  %v539_v8 = vmul.f32 %v2262_v58, %v509_v55  ;;  %v560_v11 = vadd.f32 %v552_v25, %v483_v56  ;;  %v561_v1 = vadd.f32 %v553_v51, %v484_v47 }
 0x17a   :  { %v629_v36 = vmul.f32 %v2640_v3, %v613_v62  ;;  %v630_v32 = vmul.f32 %v2596_v59, %v614_v22  ;;  %v654_v23 = vpop.permute.xlu0 %653  ;;  %v579_v54 = vpop.permute.xlu1 %578 }
 0x17b   :  { %v662_v13 = vsel %vm661_vm14, %v2518_v45, %v654_v23  ;;  %v666_v55 = vsel %vm661_vm14, %v654_v23, %v2518_v45  ;;  %v554_v35 = vmul.f32 %v2654_v24, %v538_v5  ;;  %v555_v22 = vmul.f32 %v2614_v12, %v539_v8 }
 0x17c   :  { %v690_v4 = vmul.f32 %v2328_v27, %v666_v55  ;;  %v691_v62 = vmul.f32 %v2328_v27, %v662_v13  ;;  %v637_v56 = vadd.f32 %v629_v36, %v560_v11  ;;  %v638_v25 = vadd.f32 %v630_v32, %v561_v1 }
 0x17d   :  { %v586_v51 = vsel %vm584_vm13, %v2520_v48, %v579_v54  ;;  %v590_v45 = vsel %vm584_vm13, %v579_v54, %v2520_v48  ;;  %v562_v54 = vadd.f32 %v554_v35, %v485_v46  ;;  %v563_v11 = vadd.f32 %v555_v22, %v486_v57 }
 0x17e   :  { %v706_v5 = vmul.f32 %v2668_v19, %v690_v4  ;;  %v707_v8 = vmul.f32 %v2635_v2, %v691_v62  ;;  %v615_v47 = vmul.f32 %v2292_v16, %v590_v45  ;;  %v616_v23 = vmul.f32 %v2292_v16, %v586_v51  ;;  %v731_v13 = vpop.permute.xlu0 %730  ;;  %v656_v55 = vpop.permute.xlu1 %655 }
 0x17f   :  { %v739_v1 = vsel %vm738_vm15, %v2533_v41, %v731_v13  ;;  %v743_v36 = vsel %vm738_vm15, %v731_v13, %v2533_v41  ;;  %v663_v48 = vsel %vm661_vm14, %v2535_v53, %v656_v55  ;;  %v667_v32 = vsel %vm661_vm14, %v656_v55, %v2535_v53 }
 0x180   :  { %v631_v4 = vmul.f32 %v2640_v3, %v615_v47  ;;  %v632_v62 = vmul.f32 %v2596_v59, %v616_v23  ;;  %v767_v51 = vmul.f32 %v2360_v39, %v743_v36  ;;  %v768_v45 = vmul.f32 %v2360_v39, %v739_v1 }
 0x181   :  { %v692_v41 = vmul.f32 %v2334_v31, %v667_v32  ;;  %v693_v13 = vmul.f32 %v2334_v31, %v663_v48  ;;  %v714_v16 = vadd.f32 %v706_v5, %v637_v56  ;;  %v715_v27 = vadd.f32 %v707_v8, %v638_v25 }
 0x182   :  { %v639_v7 = vadd.f32 %v631_v4, %v562_v54  ;;  %v640_v53 = vadd.f32 %v632_v62, %v563_v11  ;;  %v804_v46 = vpop.permute.xlu0 %803  ;;  %v733_v57 = vpop.permute.xlu1 %732  ;;  %v779_v35 = vmul.f32 %v2617_v17, %v767_v51  ;;  %v780_v22 = vmul.f32 %v2617_v17, %v768_v45 }
 0x183   :  { %v708_v47 = vmul.f32 %v2668_v19, %v692_v41  ;;  %v709_v23 = vmul.f32 %v2635_v2, %v693_v13  ;;  %v812_v55 = vsel %vm811_vm0, %v2546_v28, %v804_v46  ;;  %v816_v56 = vsel %vm811_vm0, %v804_v46, %v2546_v28 }
 0x184   :  { %v740_v25 = vsel %vm738_vm15, %v2548_v29, %v733_v57  ;;  %v744_v5 = vsel %vm738_vm15, %v733_v57, %v2548_v29  ;;  %v787_v8 = vadd.f32 %v779_v35, %v714_v16  ;;  %v788_v1 = vadd.f32 %v780_v22, %v715_v27 }
 0x185   :  { %v716_v36 = vadd.f32 %v708_v47, %v639_v7  ;;  %v717_v48 = vadd.f32 %v709_v23, %v640_v53  ;;  %v840_v32 = vmul.f32 %v2380_v43, %v812_v55  ;;  %v841_v54 = vmul.f32 %v2380_v43, %v816_v56 }
 0x186   :  { %v769_v11 = vmul.f32 %v2366_v40, %v744_v5  ;;  %v770_v28 = vmul.f32 %v2366_v40, %v740_v25  ;;  %v877_v4 = vpop.permute.xlu0 %876  ;;  %v806_v62 = vpop.permute.xlu1 %805  ;;  %v2789_v35 = vrot.slane %v2665_v61, %v2576_v38 }
 0x187   :  { %v885_v51 = vsel %vm884_vm1, %v2554_v26, %v877_v4  ;;  %v889_v16 = vsel %vm884_vm1, %v877_v4, %v2554_v26  ;;  %v813_v7 = vsel %vm811_vm0, %v2556_v50, %v806_v62  ;;  %v817_v27 = vsel %vm811_vm0, %v806_v62, %v2556_v50 }
 0x188   :  { %v852_v29 = vmul.f32 %v2620_v49, %v840_v32  ;;  %v853_v45 = vmul.f32 %v2620_v49, %v841_v54  ;;  %v781_v41 = vmul.f32 %v2617_v17, %v769_v11  ;;  %v782_v13 = vmul.f32 %v2617_v17, %v770_v28 }
 0x189   :  { %v913_v53 = vmul.f32 %v2404_v14, %v885_v51  ;;  %v914_v26 = vmul.f32 %v2404_v14, %v889_v16  ;;  %v842_v46 = vmul.f32 %v2386_v0, %v813_v7  ;;  %v843_v57 = vmul.f32 %v2386_v0, %v817_v27 }
 0x18a   :  { %v2793_v50 = vrot.slane %v2674_v52, %v2576_v38  ;;  %v860_v22 = vadd.f32 %v852_v29, %v787_v8  ;;  %v954_v47 = vpop.permute.xlu0 %953  ;;  %v879_v23 = vpop.permute.xlu1 %878  ;;  %v861_v55 = vadd.f32 %v853_v45, %v788_v1  ;;  %v789_v56 = vadd.f32 %v781_v41, %v716_v36 }
 0x18b   :  { %v790_v25 = vadd.f32 %v782_v13, %v717_v48  ;;  %v930_v5 = vmul.f32 %v2645_v37, %v914_v26  ;;  %v962_v32 = vsel %vm961_vm4, %v2560_v63, %v954_v47  ;;  %v966_v61 = vsel %vm961_vm4, %v954_v47, %v2560_v63 }
 0x18c   :  { %v886_v38 = vsel %vm884_vm1, %v2562_v21, %v879_v23  ;;  %v890_v52 = vsel %vm884_vm1, %v879_v23, %v2562_v21  ;;  %v929_v8 = vmul.f32 %v2789_v35, %v913_v53  ;;  %v854_v36 = vmul.f32 %v2620_v49, %v842_v46 }
 0x18d   :  { %v938_v1 = vadd.f32 %v930_v5, %v861_v55  ;;  %v855_v48 = vmul.f32 %v2620_v49, %v843_v57  ;;  %v990_v54 = vmul.f32 %v2424_v44, %v962_v32  ;;  %v991_v11 = vmul.f32 %v2424_v44, %v966_v61  ;;  %v3763_v44 = vld [vmem:[#allocation21_spill] sm:$0xff] }
 0x18e   :  { %v915_v63 = vmul.f32 %v2410_v30, %v886_v38  ;;  %v916_v28 = vmul.f32 %v2410_v30, %v890_v52  ;;  %v1031_v4 = vpop.permute.xlu0 %1030  ;;  %v956_v62 = vpop.permute.xlu1 %955  ;;  %v937_v46 = vadd.f32 %v929_v8, %v860_v22  ;;  %v862_v57 = vadd.f32 %v854_v36, %v789_v56  ;;  %v3749_v8 = vld [vmem:[#allocation36_spill] sm:$0xff] }
 0x18f   :  { %v1039_v21 = vsel %vm1038_vm6, %v2591_v10, %v1031_v4  ;;  %v1043_v51 = vsel %vm1038_vm6, %v1031_v4, %v2591_v10  ;;  %v963_v16 = vsel %vm961_vm4, %v2593_v20, %v956_v62  ;;  %v967_v7 = vsel %vm961_vm4, %v956_v62, %v2593_v20  ;;  %v3762_v30 = vld [vmem:[#allocation16_spill] sm:$0xff] }
 0x190   :  { %v1006_v27 = vmul.f32 %v2660_v15, %v990_v54  ;;  %v1007_v29 = vmul.f32 %v2604_v60, %v991_v11  ;;  %v931_v45 = vmul.f32 %v2789_v35, %v915_v63  ;;  %v932_v41 = vmul.f32 %v2645_v37, %v916_v28 }
 0x191   :  { %v1067_v13 = vmul.f32 %v2448_v42, %v1039_v21  ;;  %v1068_v10 = vmul.f32 %v2448_v42, %v1043_v51  ;;  %v992_v53 = vmul.f32 %v2430_v6, %v963_v16  ;;  %v993_v26 = vmul.f32 %v2430_v6, %v967_v7  ;;  %v3750_v51 = vld [vmem:[#allocation41_spill] sm:$0xff] }
 0x192   :  { %v863_v47 = vadd.f32 %v855_v48, %v790_v25  ;;  %v496_v20 = vpop.permute.xlu0 %495  ;;  %v1033_v23 = vpop.permute.xlu1 %1032  ;;  %v1015_v55 = vadd.f32 %v1007_v29, %v938_v1  ;;  %v1014_v56 = vadd.f32 %v1006_v27, %v937_v46  ;;  %v939_v25 = vadd.f32 %v931_v45, %v862_v57 }
 0x193   :  { %v1083_v5 = vmul.f32 %v2793_v50, %v1067_v13  ;;  %v1084_v32 = vmul.f32 %v2671_v33, %v1068_v10  ;;  %v1008_v61 = vmul.f32 %v2660_v15, %v992_v53  ;;  %v1009_v38 = vmul.f32 %v2604_v60, %v993_v26  ;;  %v3751_v13 = vld [vmem:[#allocation42_spill] sm:$0xff] }
 0x194   :  { %v940_v52 = vadd.f32 %v932_v41, %v863_v47  ;;  %v1040_v54 = vsel %vm1038_vm6, %v2637_v34, %v1033_v23  ;;  %v1044_v22 = vsel %vm1038_vm6, %v1033_v23, %v2637_v34 }
 0x195   :  { %v1069_v1 = vmul.f32 %v3749_v8, %v1040_v54  ;;  %v1070_v36 = vmul.f32 %v3749_v8, %v1044_v22  ;;  %v1092_v48 = vadd.f32 %v1084_v32, %v1015_v55  ;;  %v1091_v4 = vadd.f32 %v1083_v5, %v1014_v56 }
 0x196   :  { %v573_v11 = vpop.permute.xlu0 %572  ;;  %v498_v63 = vpop.permute.xlu1 %497  ;;  %v1017_v28 = vadd.f32 %v1009_v38, %v940_v52  ;;  %v1016_v7 = vadd.f32 %v1008_v61, %v939_v25 }
 0x197   :  { %v1085_v62 = vmul.f32 %v2793_v50, %v1069_v1  ;;  %v1086_v21 = vmul.f32 %v2671_v33, %v1070_v36  ;;  %v1120_v16 = vadd.f32 %v3750_v51, %v1092_v48  ;;  %v1119_v34 = vadd.f32 %v3750_v51, %v1091_v4 }
 0x199   :  { %v1094_v27 = vadd.f32 %v1086_v21, %v1017_v28  ;;  %v1093_v29 = vadd.f32 %v1085_v62, %v1016_v7  ;;  %v1128_v53 = vmax.f32 %v1120_v16, 0.0  ;;  %v1127_v46 = vmax.f32 %v1119_v34, 0.0 }
 0x19a   :  { %v650_v45 = vpop.permute.xlu0 %649  ;;  %v575_v41 = vpop.permute.xlu1 %574 }
 0x19b   :  { %v1122_v10 = vadd.f32 %v3751_v13, %v1094_v27  ;;  %v1121_v26 = vadd.f32 %v3751_v13, %v1093_v29  ;;  %v1136_v5 = vmin.f32 %v1128_v53, 6.0  ;;  %v1135_v38 = vmin.f32 %v1127_v46, 6.0  ;;  %v3752_v53 = vld [vmem:[#allocation10_spill] sm:$0xff] }
 0x19d   :  { %v1130_v57 = vmax.f32 %v1122_v10, 0.0  ;;  %v1129_v47 = vmax.f32 %v1121_v26, 0.0 }
 0x19e   :  { %v727_v23 = vpop.permute.xlu0 %726  ;;  %v652_v55 = vpop.permute.xlu1 %651 }
 0x19f   :  { %v1138_v32 = vmin.f32 %v1130_v57, 6.0  ;;  %v1137_v61 = vmin.f32 %v1129_v47, 6.0 }
 0x1a1   :  { %v1888_v52 = vpack.c.bf16 %v1138_v32, %v1136_v5  ;;  %v1890_v54 = vpack.c.bf16 %v1137_v61, %v1135_v38  ;;  %v3753_v61 = vld [vmem:[#allocation15_spill] sm:$0xff] }
 0x1a2   :  { %v2854_v22 = vpop.permute.xlu0 %799  ;;  %v2856_v56 = vpop.permute.xlu1 %728 }
 0x1a3   :  { %1889 = vmatprep.subr.bf16.mxu1 %v1888_v52 }
 0x1a4   :  { %1891 = vmatpush1.bf16.msra.mxu1 %v1890_v54 }
 0x1a6   :  { %v2858_v25 = vpop.permute.xlu0 %872  ;;  %v2860_v1 = vpop.permute.xlu1 %801 }
 0x1aa   :  { %v2862_v36 = vpop.permute.xlu0 %949  ;;  %v2864_v48 = vpop.permute.xlu1 %874 }
 0x1ae   :  { %v504_v28 = vpop.permute.xlu0 %503  ;;  %v2866_v4 = vpop.permute.xlu1 %951 }
 0x1af   :  { %v510_v34 = vsel %vm507_vm10, %v496_v20, %v504_v28  ;;  %v514_v27 = vsel %vm507_vm10, %v504_v28, %v496_v20 }
 0x1b0   :  { %v540_v26 = vmul.f32 %v3752_v53, %v514_v27  ;;  %v541_v46 = vmul.f32 %v3752_v53, %v510_v34  ;;  %v3754_v27 = vld [vmem:[#allocation22_spill] sm:$0xff]  ;;  %v3756_v53 = vld [vmem:[#allocation33_spill] sm:$0xff] }
 0x1b2   :  { %v581_v62 = vpop.permute.xlu0 %580  ;;  %v506_v21 = vpop.permute.xlu1 %505  ;;  %v556_v51 = vmul.f32 %v2654_v24, %v540_v26 }
 0x1b3   :  { %v587_v57 = vsel %vm584_vm13, %v573_v11, %v581_v62  ;;  %v591_v47 = vsel %vm584_vm13, %v581_v62, %v573_v11  ;;  %v511_v38 = vsel %vm507_vm10, %v498_v63, %v506_v21  ;;  %v515_v20 = vsel %vm507_vm10, %v506_v21, %v498_v63  ;;  %v3755_v11 = vld [vmem:[#allocation13_spill] sm:$0xff]  ;;  %v3757_v21 = vld [vmem:[#allocation11_spill] sm:$0xff] }
 0x1b4   :  { %v617_v52 = vmul.f32 %v3753_v61, %v591_v47  ;;  %v618_v54 = vmul.f32 %v3753_v61, %v587_v57  ;;  %v487_v62 = vmul.f32 %v3755_v11, %v3754_v27  ;;  %v488_v13 = vmul.f32 %v3755_v11, %v3756_v53  ;;  %v3758_v27 = vld [vmem:[#allocation18_spill] sm:$0xff] }
 0x1b5   :  { %v557_v63 = vmul.f32 %v2614_v12, %v541_v46  ;;  %v542_v47 = vmul.f32 %v3757_v21, %v515_v20  ;;  %v543_v57 = vmul.f32 %v3757_v21, %v511_v38  ;;  %v3759_v21 = vld [vmem:[#allocation24_spill] sm:$0xff]  ;;  %v3760_v11 = vld [vmem:[#allocation14_spill] sm:$0xff] }
 0x1b6   :  { %v658_v16 = vpop.permute.xlu0 %657  ;;  %v583_v7 = vpop.permute.xlu1 %582  ;;  %v633_v38 = vmul.f32 %v2640_v3, %v617_v52  ;;  %v634_v20 = vmul.f32 %v2596_v59, %v618_v54  ;;  %v489_v42 = vmul.f32 %v3760_v11, %v3759_v21 }
 0x1b7   :  { %v664_v28 = vsel %vm661_vm14, %v650_v45, %v658_v16  ;;  %v668_v34 = vsel %vm661_vm14, %v658_v16, %v650_v45  ;;  %v588_v61 = vsel %vm584_vm13, %v575_v41, %v583_v7  ;;  %v592_v45 = vsel %vm584_vm13, %v583_v7, %v575_v41  ;;  %v3761_v41 = vld [vmem:[#allocation35_spill] sm:$0xff] }
 0x1b8   :  { %v694_v6 = vmul.f32 %v3758_v27, %v668_v34  ;;  %v695_v53 = vmul.f32 %v3758_v27, %v664_v28  ;;  %v490_v7 = vmul.f32 %v3760_v11, %v3761_v41  ;;  %v619_v34 = vmul.f32 %v3762_v30, %v592_v45  ;;  %v3764_v11 = vld [vmem:[#allocation19_spill] sm:$0xff] }
 0x1b9   :  { %v620_v28 = vmul.f32 %v3762_v30, %v588_v61  ;;  %v565_v52 = vadd.f32 %v557_v63, %v488_v13  ;;  %v558_v41 = vmul.f32 %v2654_v24, %v542_v47  ;;  %v559_v45 = vmul.f32 %v2614_v12, %v543_v57 }
 0x1ba   :  { %v735_v29 = vpop.permute.xlu0 %734  ;;  %v660_v10 = vpop.permute.xlu1 %659  ;;  %v710_v61 = vmul.f32 %v2668_v19, %v694_v6  ;;  %v711_v30 = vmul.f32 %v2635_v2, %v695_v53  ;;  %v635_v63 = vmul.f32 %v2640_v3, %v619_v34 }
 0x1bb   :  { %v741_v26 = vsel %vm738_vm15, %v727_v23, %v735_v29  ;;  %v745_v46 = vsel %vm738_vm15, %v735_v29, %v727_v23  ;;  %v665_v27 = vsel %vm661_vm14, %v652_v55, %v660_v10  ;;  %v669_v23 = vsel %vm661_vm14, %v660_v10, %v652_v55 }
 0x1bc   :  { %v564_v29 = vadd.f32 %v556_v51, %v487_v62  ;;  %v771_v54 = vmul.f32 %v3763_v44, %v745_v46  ;;  %v772_v0 = vmul.f32 %v3763_v44, %v741_v26  ;;  %v696_v40 = vmul.f32 %v3764_v11, %v669_v23 }
 0x1bd   :  { %v697_v55 = vmul.f32 %v3764_v11, %v665_v27  ;;  %v642_v62 = vadd.f32 %v634_v20, %v565_v52  ;;  %v636_v6 = vmul.f32 %v2596_v59, %v620_v28  ;;  %v567_v46 = vadd.f32 %v559_v45, %v490_v7  ;;  %v3766_v52 = vld [vmem:[#allocation23_spill] sm:$0xff] }
 0x1be   :  { %v808_v5 = vpop.permute.xlu0 %807  ;;  %v737_v32 = vpop.permute.xlu1 %736  ;;  %v641_v10 = vadd.f32 %v633_v38, %v564_v29  ;;  %v783_v47 = vmul.f32 %v2617_v17, %v771_v54  ;;  %v784_v57 = vmul.f32 %v2617_v17, %v772_v0  ;;  %v3765_v38 = vld [vmem:[#allocation27_spill] sm:$0xff]  ;;  %v712_v0 = vmul.f32 %v2668_v19, %v696_v40 }
 0x1bf   :  { %v814_v51 = vsel %vm811_vm0, %v2854_v22, %v808_v5  ;;  %v818_v13 = vsel %vm811_vm0, %v808_v5, %v2854_v22  ;;  %v742_v27 = vsel %vm738_vm15, %v2856_v56, %v737_v32  ;;  %v746_v53 = vsel %vm738_vm15, %v737_v32, %v2856_v56 }
 0x1c0   :  { %v566_v5 = vadd.f32 %v558_v41, %v489_v42  ;;  %v844_v20 = vmul.f32 %v3765_v38, %v814_v51  ;;  %v845_v34 = vmul.f32 %v3765_v38, %v818_v13  ;;  %v718_v28 = vadd.f32 %v710_v61, %v641_v10 }
 0x1c1   :  { %v719_v23 = vadd.f32 %v711_v30, %v642_v62  ;;  %v713_v29 = vmul.f32 %v2635_v2, %v697_v55  ;;  %v773_v54 = vmul.f32 %v3766_v52, %v746_v53  ;;  %v774_v11 = vmul.f32 %v3766_v52, %v742_v27 }
 0x1c2   :  { %v881_v16 = vpop.permute.xlu0 %880  ;;  %v810_v8 = vpop.permute.xlu1 %809  ;;  %v643_v32 = vadd.f32 %v635_v63, %v566_v5  ;;  %v644_v7 = vadd.f32 %v636_v6, %v567_v46  ;;  %v791_v41 = vadd.f32 %v783_v47, %v718_v28  ;;  %v856_v40 = vmul.f32 %v2620_v49, %v844_v20 }
 0x1c3   :  { %v887_v56 = vsel %vm884_vm1, %v2858_v25, %v881_v16  ;;  %v891_v42 = vsel %vm884_vm1, %v881_v16, %v2858_v25  ;;  %v792_v30 = vadd.f32 %v784_v57, %v719_v23  ;;  %v857_v61 = vmul.f32 %v2620_v49, %v845_v34  ;;  %v3767_v25 = vld [vmem:[#allocation31_spill] sm:$0xff]  ;;  %v3769_v23 = vld [vmem:[#allocation37_spill] sm:$0xff] }
 0x1c4   :  { %v815_v55 = vsel %vm811_vm0, %v2860_v1, %v810_v8  ;;  %v819_v51 = vsel %vm811_vm0, %v810_v8, %v2860_v1  ;;  %v720_v13 = vadd.f32 %v712_v0, %v643_v32  ;;  %v721_v10 = vadd.f32 %v713_v29, %v644_v7  ;;  %v3768_v8 = vld [vmem:[#allocation28_spill] sm:$0xff] }
 0x1c5   :  { %v917_v16 = vmul.f32 %v3767_v25, %v887_v56  ;;  %v918_v62 = vmul.f32 %v3767_v25, %v891_v42  ;;  %v785_v6 = vmul.f32 %v2617_v17, %v773_v54  ;;  %v786_v47 = vmul.f32 %v2617_v17, %v774_v11  ;;  %v3770_v56 = vld [vmem:[#allocation32_spill] sm:$0xff] }
 0x1c6   :  { %v958_v21 = vpop.permute.xlu0 %957  ;;  %v883_v14 = vpop.permute.xlu1 %882  ;;  %v846_v1 = vmul.f32 %v3768_v8, %v815_v55  ;;  %v847_v53 = vmul.f32 %v3768_v8, %v819_v51  ;;  %v864_v46 = vadd.f32 %v856_v40, %v791_v41  ;;  %v865_v20 = vadd.f32 %v857_v61, %v792_v30  ;;  %v3771_v41 = vld [vmem:[#allocation39_spill] sm:$0xff] }
 0x1c7   :  { %v964_v57 = vsel %vm961_vm4, %v2862_v36, %v958_v21  ;;  %v968_v27 = vsel %vm961_vm4, %v958_v21, %v2862_v36  ;;  %v888_v5 = vsel %vm884_vm1, %v2864_v48, %v883_v14  ;;  %v892_v11 = vsel %vm884_vm1, %v883_v14, %v2864_v48 }
 0x1c8   :  { %v933_v21 = vmul.f32 %v2789_v35, %v917_v16  ;;  %v934_v28 = vmul.f32 %v2645_v37, %v918_v62  ;;  %v994_v0 = vmul.f32 %v3769_v23, %v964_v57  ;;  %v995_v29 = vmul.f32 %v3769_v23, %v968_v27  ;;  %v3785_v23 = vld [vmem:[#allocation8_spill] sm:$0xff] }
 0x1c9   :  { %v919_v42 = vmul.f32 %v3770_v56, %v888_v5  ;;  %v920_v14 = vmul.f32 %v3770_v56, %v892_v11  ;;  %v793_v32 = vadd.f32 %v785_v6, %v720_v13  ;;  %v794_v7 = vadd.f32 %v786_v47, %v721_v10 }
 0x1ca   :  { %v1027_v26 = vpop.permute.xlu0 %1026  ;;  %v960_v22 = vpop.permute.xlu1 %959  ;;  %v858_v61 = vmul.f32 %v2620_v49, %v846_v1  ;;  %v859_v55 = vmul.f32 %v2620_v49, %v847_v53  ;;  %v1010_v62 = vmul.f32 %v2660_v15, %v994_v0  ;;  %v942_v6 = vadd.f32 %v934_v28, %v865_v20  ;;  %v3773_v53 = vld [vmem:[#allocation40_spill] sm:$0xff] }
 0x1cb   :  { %v965_v48 = vsel %vm961_vm4, %v2866_v4, %v960_v22  ;;  %v935_v47 = vmul.f32 %v2789_v35, %v919_v42  ;;  %v936_v57 = vmul.f32 %v2645_v37, %v920_v14 }
 0x1cc   :  { %v866_v11 = vadd.f32 %v858_v61, %v793_v32 }
 0x1ce   :  { %v1029_v45 = vpop.permute.xlu1 %1028  ;;  %v1035_v63 = vpop.permute.xlu0 %1034  ;;  %v943_v20 = vadd.f32 %v935_v47, %v866_v11 }
 0x1cf   :  { %v1041_v34 = vsel %vm1038_vm6, %v1027_v26, %v1035_v63  ;;  %v1045_v36 = vsel %vm1038_vm6, %v1035_v63, %v1027_v26  ;;  %v969_v26 = vsel %vm961_vm4, %v960_v22, %v2866_v4  ;;  %v1011_v4 = vmul.f32 %v2604_v60, %v995_v29  ;;  %v3772_v22 = vld [vmem:[#allocation38_spill] sm:$0xff] }
 0x1d0   :  { %v1071_v30 = vmul.f32 %v3771_v41, %v1041_v34  ;;  %v1072_v40 = vmul.f32 %v3771_v41, %v1045_v36  ;;  %v996_v13 = vmul.f32 %v3772_v22, %v965_v48  ;;  %v997_v10 = vmul.f32 %v3772_v22, %v969_v26 }
 0x1d1   :  { %v941_v63 = vadd.f32 %v933_v21, %v864_v46  ;;  %v867_v34 = vadd.f32 %v859_v55, %v794_v7  ;;  %v1019_v0 = vadd.f32 %v1011_v4, %v942_v6  ;;  %v1874_v6 = vld [vmem:[%s3615_s0 + $0x38] sm:$0x1] }
 0x1d2   :  { %v1037_v54 = vpop.permute.xlu1 %1036  ;;  %v1087_v27 = vmul.f32 %v2793_v50, %v1071_v30  ;;  %v1088_v1 = vmul.f32 %v2671_v33, %v1072_v40  ;;  %v1012_v29 = vmul.f32 %v2660_v15, %v996_v13  ;;  %v1013_v46 = vmul.f32 %v2604_v60, %v997_v10 }
 0x1d3   :  { %v1042_v51 = vsel %vm1038_vm6, %v1029_v45, %v1037_v54  ;;  %v1046_v16 = vsel %vm1038_vm6, %v1037_v54, %v1029_v45  ;;  %v1018_v36 = vadd.f32 %v1010_v62, %v941_v63  ;;  %v944_v21 = vadd.f32 %v936_v57, %v867_v34  ;;  %v3029_v63 = vld [vmem:[%s3615_s0 + $0x28] sm:$0xff]  ;;  %v3038_v34 = vld [vmem:[%s3615_s0 + $0x20] sm:$0xff] }
 0x1d4   :  { %v1073_v45 = vmul.f32 %v3773_v53, %v1042_v51  ;;  %v1074_v5 = vmul.f32 %v3773_v53, %v1046_v16  ;;  %v1096_v54 = vadd.f32 %v1088_v1, %v1019_v0  ;;  %v1020_v26 = vadd.f32 %v1012_v29, %v943_v20  ;;  %3776 = vst [vmem:[#allocation24_spill] sm:$0xff] %v3029_v63  ;;  %v3046_v0 = vld [vmem:[%s3619_s4] sm:$0xff] }
 0x1d5   :  { %v1095_v28 = vadd.f32 %v1087_v27, %v1018_v36  ;;  %v1021_v30 = vadd.f32 %v1013_v46, %v944_v21  ;;  %v1896_v11 = vpack.c.bf16 %v1874_v6, %v3029_v63  ;;  %3777 = vst [vmem:[#allocation35_spill] sm:$0xff] %v3038_v34  ;;  %v1873_v36 = vld [vmem:[%s3615_s0 + $0x30] sm:$0x1]  ;;  %3778 = vst [vmem:[#allocation21_spill] sm:$0xff] %v3046_v0  ;;  %v3780_v20 = vmov 0.0   ;;  %v1932_v21 = vld [vmem:[%s3616_s1] sm:$0xff] }
 0x1d6   :  { %v1089_v42 = vmul.f32 %v2793_v50, %v1073_v45  ;;  %v1090_v14 = vmul.f32 %v2671_v33, %v1074_v5  ;;  %v1899_v29 = vpack.c.bf16 %v1873_v36, %v3038_v34  ;;  %v3783_v63 = vld [vmem:[#allocation6_spill] sm:$0xff] }
 0x1d8   :  { %v1097_v40 = vadd.f32 %v1089_v42, %v1020_v26  ;;  %v1098_v61 = vadd.f32 %v1090_v14, %v1021_v30  ;;  %v1935_v42 = vld [vmem:[%s3616_s1 + $0x18] sm:$0xff] }
 0x1df   :  { %v3018_v48 = vpop.permute.xlu0 %1111 }
 0x1e0   :  { %3774 = vst [vmem:[#allocation22_spill] sm:$0xff] %v3018_v48  ;;  %v1123_v32 = vadd.f32 %v3018_v48, %v1095_v28  ;;  %v1124_v7 = vadd.f32 %v3018_v48, %v1096_v54  ;;  %v1933_v28 = vld [vmem:[%s3616_s1 + $0x8] sm:$0xff]  ;;  %v1934_v54 = vld [vmem:[%s3616_s1 + $0x10] sm:$0xff] }
 0x1e2   :  { %v1131_v51 = vmax.f32 %v1123_v32, 0.0  ;;  %v1132_v16 = vmax.f32 %v1124_v7, 0.0 }
 0x1e3   :  { %v3022_v55 = vpop.permute.xlu1 %1116 }
 0x1e4   :  { %3775 = vst [vmem:[#allocation33_spill] sm:$0xff] %v3022_v55  ;;  %v1125_v62 = vadd.f32 %v3022_v55, %v1097_v40  ;;  %v1126_v4 = vadd.f32 %v3022_v55, %v1098_v61  ;;  %v1140_v47 = vmin.f32 %v1132_v16, 6.0  ;;  %v1139_v27 = vmin.f32 %v1131_v51, 6.0 }
 0x1e6   :  { %v1133_v13 = vmax.f32 %v1125_v62, 0.0  ;;  %v1134_v10 = vmax.f32 %v1126_v4, 0.0 }
 0x1e8   :  { %v1142_v57 = vmin.f32 %v1134_v10, 6.0  ;;  %v1141_v1 = vmin.f32 %v1133_v13, 6.0 }
 0x1ea   :  { %v1892_v45 = vpack.c.bf16 %v1142_v57, %v1140_v47  ;;  %v1894_v5 = vpack.c.bf16 %v1141_v1, %v1139_v27 }
 0x1ec   :  { %1893 = vmatprep.subr.bf16.mxu1 %v1892_v45 }
 0x1ed   :  { %1895 = vmatpush1.bf16.msra.mxu1 %v1894_v5 }
 0x1ee   :  { %1898 = vmatprep.subr.msk.bf16.mxu1 %vm2026_vm2, %v1896_v11 }
 0x1f0   :  { %1870 = vmatmul.mubr.msk.f32.vlgmr.msra.gmra.mrb[0].mxu1 %vm155_vm5, %v3046_v0 }
 0x1f1   :  { %1901 = vmatpush1.bf16.msk.msra.mxu1 %vm2026_vm2, %v1899_v29  ;;  %1301 = vmatprep.mubr.f32.mxu1 %v3780_v20 }
 0x1f4   :  { %1877 = vmatmul.mubr.msk.f32.vlgmr.msra.gmra.mrb[2].mxu1 %vm338_vm3, %v1932_v21 }
 0x1f5   :  { %1307 = vmatprep.mubr.f32.mxu1 %v3780_v20 }
 0x1f8   :  { %1878 = vmatmul.mubr.msk.f32.gmra.mrb[4].mxu1 %vm338_vm3, %v1933_v28 }
 0x1f9   :  { %1313 = vmatprep.mubr.f32.mxu1 %v3780_v20 }
 0x1fc   :  { %1879 = vmatmul.mubr.msk.f32.gmra.mrb[6].mxu1 %vm338_vm3, %v1934_v54 }
 0x1fd   :  { %1319 = vmatprep.mubr.f32.mxu1 %v3780_v20 }
 0x200   :  { %1880 = vmatmul.mubr.msk.f32.gmra.mrb[8].mxu1 %vm338_vm3, %v1935_v42 }
 0x2c3   :  { %v3075_v14 = vpop.f32.mrb[0].mxu1 }
 0x2c4   :  { %3781 = vst [vmem:[#allocation27_spill] sm:$0xff] %v3075_v14  ;;  %v3077_v26 = vpop.f32.mrb[1].mxu1 }
 0x2c5   :  { %3782 = vst [vmem:[#allocation23_spill] sm:$0xff] %v3077_v26 }
 0x2c7   :  { %v1303_v30 = vpop.f32.mrb[2].mxu1 }
 0x2c8   :  { %v1326_v32 = vmax.f32 %v1303_v30, 0.0  ;;  %v1305_v7 = vpop.f32.mrb[3].mxu1 }
 0x2c9   :  { %v1327_v47 = vmax.f32 %v1305_v7, 0.0  ;;  %v333_v7 = vld [vmem:[%s3620_s5] sm:$0xff] }
 0x2ca   :  { %v3079_v40 = vmin.f32 %v1326_v32, 6.0 }
 0x2cb   :  { %v1309_v61 = vpop.f32.mrb[4].mxu1  ;;  %v3113_v57 = vmin.f32 %v1327_v47, 6.0 }
 0x2cc   :  { %v1328_v51 = vmax.f32 %v1309_v61, 0.0  ;;  %1350 = vrot.lane.b32.xlu0 %v3079_v40, %s1974_s2  ;;  %v1311_v16 = vpop.f32.mrb[5].mxu1 }
 0x2cd   :  { %v1329_v27 = vmax.f32 %v1311_v16, 0.0 }
 0x2ce   :  { %v3083_v62 = vmin.f32 %v1328_v51, 6.0 }
 0x2cf   :  { %v1315_v4 = vpop.f32.mrb[6].mxu1  ;;  %v3119_v1 = vmin.f32 %v1329_v27, 6.0 }
 0x2d0   :  { %1398 = vrot.lane.b32.xlu0 %v3079_v40, %s1967_s11  ;;  %1352 = vrot.lane.b32.xlu1 %v3083_v62, %s1974_s2  ;;  %v1317_v13 = vpop.f32.mrb[7].mxu1  ;;  %v1330_v45 = vmax.f32 %v1315_v4, 0.0 }
 0x2d1   :  { %v1331_v29 = vmax.f32 %v1317_v13, 0.0 }
 0x2d2   :  { %v3149_v5 = vmin.f32 %v1330_v45, 6.0 }
 0x2d3   :  { %v1321_v10 = vpop.f32.mrb[8].mxu1  ;;  %v3185_v46 = vmin.f32 %v1331_v29, 6.0 }
 0x2d4   :  { %1446 = vrot.lane.b32.xlu0 %v3079_v40, %s1975_s29  ;;  %1400 = vrot.lane.b32.xlu1 %v3083_v62, %s1967_s11  ;;  %v1323_v6 = vpop.f32.mrb[9].mxu1  ;;  %v1332_v11 = vmax.f32 %v1321_v10, 0.0 }
 0x2d5   :  { %v1333_v20 = vmax.f32 %v1323_v6, 0.0 }
 0x2d6   :  { %v3155_v36 = vmin.f32 %v1332_v11, 6.0 }
 0x2d7   :  { %v3191_v21 = vmin.f32 %v1333_v20, 6.0 }
 0x2d8   :  { %1494 = vrot.lane.b32.xlu0 %v3079_v40, %s1976_s30  ;;  %1448 = vrot.lane.b32.xlu1 %v3083_v62, %s1975_s29 }
 0x2dc   :  { %1542 = vrot.lane.b32.xlu0 %v3079_v40, %s1977_s8  ;;  %1496 = vrot.lane.b32.xlu1 %v3083_v62, %s1976_s30 }
 0x2e0   :  { %1590 = vrot.lane.b32.xlu0 %v3079_v40, %s1978_s9  ;;  %1544 = vrot.lane.b32.xlu1 %v3083_v62, %s1977_s8 }
 0x2e4   :  { %1638 = vrot.lane.b32.xlu0 %v3079_v40, %s1973_s7  ;;  %1592 = vrot.lane.b32.xlu1 %v3083_v62, %s1978_s9 }
 0x2e8   :  { %1686 = vrot.lane.b32.xlu0 %v3079_v40, %s1979_s10  ;;  %1640 = vrot.lane.b32.xlu1 %v3083_v62, %s1973_s7 }
 0x2ec   :  { %1358 = vrot.lane.b32.xlu0 %v3113_v57, %s1974_s2  ;;  %1688 = vrot.lane.b32.xlu1 %v3083_v62, %s1979_s10 }
 0x2f0   :  { %1406 = vrot.lane.b32.xlu0 %v3113_v57, %s1967_s11  ;;  %1360 = vrot.lane.b32.xlu1 %v3119_v1, %s1974_s2 }
 0x2f4   :  { %1454 = vrot.lane.b32.xlu0 %v3113_v57, %s1975_s29  ;;  %1408 = vrot.lane.b32.xlu1 %v3119_v1, %s1967_s11 }
 0x2f8   :  { %1502 = vrot.lane.b32.xlu0 %v3113_v57, %s1976_s30  ;;  %1456 = vrot.lane.b32.xlu1 %v3119_v1, %s1975_s29 }
 0x2fc   :  { %1550 = vrot.lane.b32.xlu0 %v3113_v57, %s1977_s8  ;;  %1504 = vrot.lane.b32.xlu1 %v3119_v1, %s1976_s30 }
 0x300   :  { %1598 = vrot.lane.b32.xlu0 %v3113_v57, %s1978_s9  ;;  %1552 = vrot.lane.b32.xlu1 %v3119_v1, %s1977_s8 }
 0x304   :  { %1646 = vrot.lane.b32.xlu0 %v3113_v57, %s1973_s7  ;;  %1600 = vrot.lane.b32.xlu1 %v3119_v1, %s1978_s9 }
 0x308   :  { %1694 = vrot.lane.b32.xlu0 %v3113_v57, %s1979_s10  ;;  %1648 = vrot.lane.b32.xlu1 %v3119_v1, %s1973_s7 }
 0x30c   :  { %1696 = vrot.lane.b32.xlu1 %v3119_v1, %s1979_s10  ;;  %1354 = vrot.lane.b32.xlu0 %v3149_v5, %s1974_s2 }
 0x310   :  { %1402 = vrot.lane.b32.xlu0 %v3149_v5, %s1967_s11  ;;  %1356 = vrot.lane.b32.xlu1 %v3155_v36, %s1974_s2 }
 0x314   :  { %1450 = vrot.lane.b32.xlu0 %v3149_v5, %s1975_s29  ;;  %1404 = vrot.lane.b32.xlu1 %v3155_v36, %s1967_s11 }
 0x318   :  { %1498 = vrot.lane.b32.xlu0 %v3149_v5, %s1976_s30  ;;  %1452 = vrot.lane.b32.xlu1 %v3155_v36, %s1975_s29 }
 0x31c   :  { %1546 = vrot.lane.b32.xlu0 %v3149_v5, %s1977_s8  ;;  %1500 = vrot.lane.b32.xlu1 %v3155_v36, %s1976_s30 }
 0x320   :  { %1594 = vrot.lane.b32.xlu0 %v3149_v5, %s1978_s9  ;;  %1548 = vrot.lane.b32.xlu1 %v3155_v36, %s1977_s8 }
 0x324   :  { %1642 = vrot.lane.b32.xlu0 %v3149_v5, %s1973_s7  ;;  %1596 = vrot.lane.b32.xlu1 %v3155_v36, %s1978_s9 }
 0x328   :  { %1690 = vrot.lane.b32.xlu0 %v3149_v5, %s1979_s10  ;;  %1644 = vrot.lane.b32.xlu1 %v3155_v36, %s1973_s7 }
 0x32c   :  { %1362 = vrot.lane.b32.xlu0 %v3185_v46, %s1974_s2  ;;  %1692 = vrot.lane.b32.xlu1 %v3155_v36, %s1979_s10 }
 0x330   :  { %1410 = vrot.lane.b32.xlu0 %v3185_v46, %s1967_s11  ;;  %1364 = vrot.lane.b32.xlu1 %v3191_v21, %s1974_s2 }
 0x334   :  { %1458 = vrot.lane.b32.xlu0 %v3185_v46, %s1975_s29  ;;  %1412 = vrot.lane.b32.xlu1 %v3191_v21, %s1967_s11 }
 0x338   :  { %1506 = vrot.lane.b32.xlu0 %v3185_v46, %s1976_s30  ;;  %1460 = vrot.lane.b32.xlu1 %v3191_v21, %s1975_s29 }
 0x33c   :  { %1554 = vrot.lane.b32.xlu0 %v3185_v46, %s1977_s8  ;;  %1508 = vrot.lane.b32.xlu1 %v3191_v21, %s1976_s30 }
 0x33e   :  { %v1351_v28 = vpop.permute.xlu0 %1350 }
 0x340   :  { %1602 = vrot.lane.b32.xlu0 %v3185_v46, %s1978_s9  ;;  %1556 = vrot.lane.b32.xlu1 %v3191_v21, %s1977_s8  ;;  %s1980_s8 = smov [#allocation2]  }
 0x342   :  { %v1399_v54 = vpop.permute.xlu0 %1398  ;;  %v1353_v42 = vpop.permute.xlu1 %1352 }
 0x344   :  { %1650 = vrot.lane.b32.xlu0 %v3185_v46, %s1973_s7  ;;  %1604 = vrot.lane.b32.xlu1 %v3191_v21, %s1978_s9  ;;  %s1839_s9 = sshll.u32 %s1980_s8, 4  ;;  %s1840_s9 = int_to_ptr.vmem [resolvable:$true] %s1839_s9 }
 0x345   :  { %p1943_p1 = scmp.lt.s32.totalorder %s1840_s9, %s1840_s9 }
 0x346   :  { %v1447_v30 = vpop.permute.xlu0 %1446  ;;  %v1401_v32 = vpop.permute.xlu1 %1400 }
 0x348   :  { %1698 = vrot.lane.b32.xlu0 %v3185_v46, %s1979_s10  ;;  %1652 = vrot.lane.b32.xlu1 %v3191_v21, %s1973_s7 }
 0x34a   :  { %v1495_v61 = vpop.permute.xlu0 %1494  ;;  %v1449_v51 = vpop.permute.xlu1 %1448 }
 0x34c   :  { %1145 = vperm.xlu0 %1931, %v333_v7   ;;  %1700 = vrot.lane.b32.xlu1 %v3191_v21, %s1979_s10 }
 0x34e   :  { %v3226_v16 = vpop.permute.xlu0 %1542  ;;  %v3228_v4 = vpop.permute.xlu1 %1496 }
 0x352   :  { %v3230_v13 = vpop.permute.xlu0 %1590  ;;  %v3232_v10 = vpop.permute.xlu1 %1544 }
 0x356   :  { %v3234_v6 = vpop.permute.xlu0 %1638  ;;  %v3236_v47 = vpop.permute.xlu1 %1592 }
 0x35a   :  { %v3238_v27 = vpop.permute.xlu0 %1686  ;;  %v3240_v45 = vpop.permute.xlu1 %1640 }
 0x35e   :  { %v1359_v11 = vpop.permute.xlu0 %1358  ;;  %v3242_v29 = vpop.permute.xlu1 %1688 }
 0x35f   :  { %v1366_v20 = vsel %vm507_vm10, %v1351_v28, %v1359_v11  ;;  %v1370_v7 = vsel %vm507_vm10, %v1359_v11, %v1351_v28  ;;  %v3784_v11 = vld [vmem:[#allocation7_spill] sm:$0xff] }
 0x360   :  { %v1374_v34 = vmul.f32 %v1370_v7, %v3783_v63  ;;  %v1375_v0 = vmul.f32 %v1366_v20, %v3783_v63  ;;  %v1343_v20 = vmul.f32 %v3113_v57, %v3784_v11 }
 0x362   :  { %v1382_v26 = vmul.f32 %v1374_v34, %v2654_v24  ;;  %v1383_v14 = vmul.f32 %v1375_v0, %v2614_v12  ;;  %v1407_v55 = vpop.permute.xlu0 %1406  ;;  %v1361_v48 = vpop.permute.xlu1 %1360  ;;  %v1342_v0 = vmul.f32 %v3079_v40, %v3784_v11 }
 0x363   :  { %v1414_v53 = vsel %vm584_vm13, %v1399_v54, %v1407_v55  ;;  %v1418_v22 = vsel %vm584_vm13, %v1407_v55, %v1399_v54  ;;  %v1367_v41 = vsel %vm507_vm10, %v1353_v42, %v1361_v48  ;;  %v1371_v28 = vsel %vm507_vm10, %v1361_v48, %v1353_v42 }
 0x364   :  { %v1422_v63 = vmul.f32 %v1418_v22, %v2282_v9  ;;  %v1423_v34 = vmul.f32 %v1414_v53, %v2282_v9  ;;  %v1376_v7 = vmul.f32 %v1371_v28, %v2262_v58  ;;  %v1377_v55 = vmul.f32 %v1367_v41, %v2262_v58 }
 0x365   :  { %v1344_v48 = vmul.f32 %v3083_v62, %v3785_v23  ;;  %v1345_v9 = vmul.f32 %v3119_v1, %v3785_v23  ;;  %v1390_v40 = vadd.f32 %v1382_v26, %v1342_v0  ;;  %v1391_v42 = vadd.f32 %v1383_v14, %v1343_v20  ;;  %v3787_v0 = vld [vmem:[#allocation9_spill] sm:$0xff] }
 0x366   :  { %v1430_v54 = vmul.f32 %v1422_v63, %v2640_v3  ;;  %v1431_v56 = vmul.f32 %v1423_v34, %v2596_v59  ;;  %v1455_v22 = vpop.permute.xlu0 %1454  ;;  %v1409_v53 = vpop.permute.xlu1 %1408  ;;  %v1384_v41 = vmul.f32 %v1376_v7, %v2654_v24  ;;  %v1385_v28 = vmul.f32 %v1377_v55, %v2614_v12  ;;  %v3786_v63 = vld [vmem:[#allocation12_spill] sm:$0xff] }
 0x367   :  { %v1462_v57 = vsel %vm661_vm14, %v1447_v30, %v1455_v22  ;;  %v1466_v58 = vsel %vm661_vm14, %v1455_v22, %v1447_v30  ;;  %v1415_v26 = vsel %vm584_vm13, %v1401_v32, %v1409_v53  ;;  %v1419_v14 = vsel %vm584_vm13, %v1409_v53, %v1401_v32 }
 0x368   :  { %v1470_v34 = vmul.f32 %v1466_v58, %v3786_v63  ;;  %v1471_v62 = vmul.f32 %v1462_v57, %v3786_v63  ;;  %v1438_v11 = vadd.f32 %v1430_v54, %v1390_v40  ;;  %v1439_v23 = vadd.f32 %v1431_v56, %v1391_v42 }
 0x369   :  { %v1424_v20 = vmul.f32 %v1419_v14, %v3787_v0  ;;  %v1425_v7 = vmul.f32 %v1415_v26, %v3787_v0  ;;  %v1392_v53 = vadd.f32 %v1384_v41, %v1344_v48  ;;  %v1393_v42 = vadd.f32 %v1385_v28, %v1345_v9 }
 0x36a   :  { %v1478_v1 = vmul.f32 %v1470_v34, %v2668_v19  ;;  %v1479_v30 = vmul.f32 %v1471_v62, %v2635_v2  ;;  %v1503_v55 = vpop.permute.xlu0 %1502  ;;  %v1457_v22 = vpop.permute.xlu1 %1456 }
 0x36b   :  { %v1510_v54 = vsel %vm738_vm15, %v1495_v61, %v1503_v55  ;;  %v1514_v56 = vsel %vm738_vm15, %v1503_v55, %v1495_v61  ;;  %v1463_v40 = vsel %vm661_vm14, %v1449_v51, %v1457_v22  ;;  %v1467_v32 = vsel %vm661_vm14, %v1457_v22, %v1449_v51 }
 0x36c   :  { %v1432_v57 = vmul.f32 %v1424_v20, %v2640_v3  ;;  %v1433_v58 = vmul.f32 %v1425_v7, %v2596_v59  ;;  %v1518_v63 = vmul.f32 %v1514_v56, %v2360_v39  ;;  %v1519_v34 = vmul.f32 %v1510_v54, %v2360_v39  ;;  %v3788_v56 = vld [vmem:[#allocation17_spill] sm:$0xff] }
 0x36d   :  { %v1472_v62 = vmul.f32 %v1467_v32, %v2334_v31  ;;  %v1473_v61 = vmul.f32 %v1463_v40, %v2334_v31  ;;  %v1486_v26 = vadd.f32 %v1478_v1, %v1438_v11  ;;  %v1487_v14 = vadd.f32 %v1479_v30, %v1439_v23 }
 0x36e   :  { %v1440_v0 = vadd.f32 %v1432_v57, %v1392_v53  ;;  %v1441_v55 = vadd.f32 %v1433_v58, %v1393_v42  ;;  %v1551_v8 = vpop.permute.xlu0 %1550  ;;  %v1505_v51 = vpop.permute.xlu1 %1504  ;;  %v1526_v48 = vmul.f32 %v1518_v63, %v2617_v17  ;;  %v1527_v9 = vmul.f32 %v1519_v34, %v2617_v17 }
 0x36f   :  { %v1480_v41 = vmul.f32 %v1472_v62, %v2668_v19  ;;  %v1481_v28 = vmul.f32 %v1473_v61, %v2635_v2  ;;  %v1558_v39 = vsel %vm811_vm0, %v3226_v16, %v1551_v8  ;;  %v1562_v31 = vsel %vm811_vm0, %v1551_v8, %v3226_v16  ;;  %v3789_v62 = vld [vmem:[#allocation25_spill] sm:$0xff] }
 0x370   :  { %v1511_v11 = vsel %vm738_vm15, %v3228_v4, %v1505_v51  ;;  %v1515_v23 = vsel %vm738_vm15, %v1505_v51, %v3228_v4  ;;  %v1534_v1 = vadd.f32 %v1526_v48, %v1486_v26  ;;  %v1535_v30 = vadd.f32 %v1527_v9, %v1487_v14  ;;  %v3790_v26 = vld [vmem:[#allocation20_spill] sm:$0xff] }
 0x371   :  { %v1488_v20 = vadd.f32 %v1480_v41, %v1440_v0  ;;  %v1489_v7 = vadd.f32 %v1481_v28, %v1441_v55  ;;  %v1566_v22 = vmul.f32 %v1558_v39, %v2380_v43  ;;  %v1567_v54 = vmul.f32 %v1562_v31, %v2380_v43 }
 0x372   :  { %v1520_v40 = vmul.f32 %v1515_v23, %v3788_v56  ;;  %v1521_v8 = vmul.f32 %v1511_v11, %v3788_v56  ;;  %v1599_v16 = vpop.permute.xlu0 %1598  ;;  %v1553_v32 = vpop.permute.xlu1 %1552 }
 0x373   :  { %v1606_v53 = vsel %vm884_vm1, %v3230_v13, %v1599_v16  ;;  %v1610_v4 = vsel %vm884_vm1, %v1599_v16, %v3230_v13  ;;  %v1559_v42 = vsel %vm811_vm0, %v3232_v10, %v1553_v32  ;;  %v1563_v43 = vsel %vm811_vm0, %v1553_v32, %v3232_v10 }
 0x374   :  { %v1574_v57 = vmul.f32 %v1566_v22, %v2620_v49  ;;  %v1575_v58 = vmul.f32 %v1567_v54, %v2620_v49  ;;  %v1528_v63 = vmul.f32 %v1520_v40, %v2617_v17  ;;  %v1529_v34 = vmul.f32 %v1521_v8, %v2617_v17  ;;  %v3791_v54 = vld [vmem:[#allocation29_spill] sm:$0xff]  ;;  %v3792_v8 = vld [vmem:[#allocation26_spill] sm:$0xff] }
 0x375   :  { %v1614_v61 = vmul.f32 %v1606_v53, %v3789_v62  ;;  %v1615_v13 = vmul.f32 %v1610_v4, %v3789_v62  ;;  %v1568_v14 = vmul.f32 %v1559_v42, %v3790_v26  ;;  %v1569_v0 = vmul.f32 %v1563_v43, %v3790_v26  ;;  %v3793_v62 = vld [vmem:[#allocation34_spill] sm:$0xff] }
 0x376   :  { %v1582_v55 = vadd.f32 %v1574_v57, %v1534_v1  ;;  %v1583_v51 = vadd.f32 %v1575_v58, %v1535_v30  ;;  %v1647_v48 = vpop.permute.xlu0 %1646  ;;  %v1601_v10 = vpop.permute.xlu1 %1600  ;;  %v1536_v9 = vadd.f32 %v1528_v63, %v1488_v20  ;;  %v1537_v41 = vadd.f32 %v1529_v34, %v1489_v7 }
 0x377   :  { %v1622_v28 = vmul.f32 %v1614_v61, %v2789_v35  ;;  %v1623_v39 = vmul.f32 %v1615_v13, %v2645_v37  ;;  %v1654_v31 = vsel %vm961_vm4, %v3234_v6, %v1647_v48  ;;  %v1658_v11 = vsel %vm961_vm4, %v1647_v48, %v3234_v6  ;;  %v3794_v13 = vld [vmem:[#allocation30_spill] sm:$0xff] }
 0x378   :  { %v1607_v23 = vsel %vm884_vm1, %v3236_v47, %v1601_v10  ;;  %v1611_v1 = vsel %vm884_vm1, %v1601_v10, %v3236_v47  ;;  %v1576_v7 = vmul.f32 %v1568_v14, %v2620_v49  ;;  %v1577_v22 = vmul.f32 %v1569_v0, %v2620_v49 }
 0x379   :  { %v1630_v30 = vadd.f32 %v1622_v28, %v1582_v55  ;;  %v1631_v20 = vadd.f32 %v1623_v39, %v1583_v51  ;;  %v1662_v56 = vmul.f32 %v1654_v31, %v3791_v54  ;;  %v1663_v40 = vmul.f32 %v1658_v11, %v3791_v54 }
 0x37a   :  { %v1616_v6 = vmul.f32 %v1607_v23, %v3792_v8  ;;  %v1617_v16 = vmul.f32 %v1611_v1, %v3792_v8  ;;  %v1695_v32 = vpop.permute.xlu0 %1694  ;;  %v1649_v53 = vpop.permute.xlu1 %1648  ;;  %v1584_v0 = vadd.f32 %v1576_v7, %v1536_v9  ;;  %v1585_v55 = vadd.f32 %v1577_v22, %v1537_v41  ;;  %v3795_v7 = vld [vmem:[#allocation36_spill] sm:$0xff] }
 0x37b   :  { %v1702_v47 = vsel %vm1038_vm6, %v3238_v27, %v1695_v32  ;;  %v1706_v4 = vsel %vm1038_vm6, %v1695_v32, %v3238_v27  ;;  %v1655_v42 = vsel %vm961_vm4, %v3240_v45, %v1649_v53  ;;  %v1659_v43 = vsel %vm961_vm4, %v1649_v53, %v3240_v45 }
 0x37c   :  { %v1670_v57 = vmul.f32 %v1662_v56, %v2660_v15  ;;  %v1671_v58 = vmul.f32 %v1663_v40, %v2604_v60  ;;  %v1624_v63 = vmul.f32 %v1616_v6, %v2789_v35  ;;  %v1625_v34 = vmul.f32 %v1617_v16, %v2645_v37  ;;  %v3796_v16 = vld [vmem:[#allocation41_spill] sm:$0xff] }
 0x37d   :  { %v1710_v61 = vmul.f32 %v1702_v47, %v3793_v62  ;;  %v1711_v27 = vmul.f32 %v1706_v4, %v3793_v62  ;;  %v1664_v26 = vmul.f32 %v1655_v42, %v3794_v13  ;;  %v1665_v14 = vmul.f32 %v1659_v43, %v3794_v13 }
 0x37e   :  { %v1678_v51 = vadd.f32 %v1670_v57, %v1630_v30  ;;  %v1679_v45 = vadd.f32 %v1671_v58, %v1631_v20  ;;  %v1697_v48 = vpop.permute.xlu1 %1696  ;;  %v1355_v10 = vpop.permute.xlu0 %1354  ;;  %v1632_v41 = vadd.f32 %v1624_v63, %v1584_v0  ;;  %v1633_v1 = vadd.f32 %v1625_v34, %v1585_v55  ;;  %v3797_v63 = vld [vmem:[#allocation42_spill] sm:$0xff] }
 0x37f   :  { %v1718_v28 = vmul.f32 %v1710_v61, %v2793_v50  ;;  %v1719_v39 = vmul.f32 %v1711_v27, %v2671_v33  ;;  %v1672_v31 = vmul.f32 %v1664_v26, %v2660_v15  ;;  %v1673_v11 = vmul.f32 %v1665_v14, %v2604_v60 }
 0x380   :  { %v1703_v23 = vsel %vm1038_vm6, %v3242_v29, %v1697_v48  ;;  %v1707_v9 = vsel %vm1038_vm6, %v1697_v48, %v3242_v29 }
 0x381   :  { %v1726_v30 = vadd.f32 %v1718_v28, %v1678_v51  ;;  %v1727_v20 = vadd.f32 %v1719_v39, %v1679_v45  ;;  %v1712_v22 = vmul.f32 %v1703_v23, %v3795_v7  ;;  %v1713_v54 = vmul.f32 %v1707_v9, %v3795_v7 }
 0x382   :  { %v1403_v56 = vpop.permute.xlu0 %1402  ;;  %v1357_v40 = vpop.permute.xlu1 %1356  ;;  %v1680_v8 = vadd.f32 %v1672_v31, %v1632_v41  ;;  %v1681_v6 = vadd.f32 %v1673_v11, %v1633_v1 }
 0x383   :  { %v1734_v32 = vadd.f32 %v1726_v30, %v3796_v16  ;;  %v1720_v53 = vmul.f32 %v1712_v22, %v2793_v50  ;;  %v1721_v47 = vmul.f32 %v1713_v54, %v2671_v33  ;;  %v1735_v29 = vadd.f32 %v1727_v20, %v3796_v16 }
 0x385   :  { %v1728_v4 = vadd.f32 %v1720_v53, %v1680_v8  ;;  %v1729_v42 = vadd.f32 %v1721_v47, %v1681_v6  ;;  %v1742_v58 = vmax.f32 %v1734_v32, 0.0  ;;  %v1743_v61 = vmax.f32 %v1735_v29, 0.0  ;;  %v3798_v8 = vld [vmem:[#allocation10_spill] sm:$0xff] }
 0x386   :  { %v1451_v43 = vpop.permute.xlu0 %1450  ;;  %v3400_v57 = vpop.permute.xlu1 %1404 }
 0x387   :  { %v1736_v34 = vadd.f32 %v1728_v4, %v3797_v63  ;;  %v1737_v62 = vadd.f32 %v1729_v42, %v3797_v63  ;;  %v1751_v0 = vmin.f32 %v1743_v61, 6.0  ;;  %v1750_v51 = vmin.f32 %v1742_v58, 6.0  ;;  %v3799_v63 = vld [vmem:[#allocation15_spill] sm:$0xff]  ;;  %v3800_v61 = vld [vmem:[#allocation13_spill] sm:$0xff] }
 0x389   :  { %v1744_v27 = vmax.f32 %v1736_v34, 0.0  ;;  %v1745_v14 = vmax.f32 %v1737_v62, 0.0 }
 0x38a   :  { %v3404_v13 = vpop.permute.xlu0 %1498  ;;  %v3406_v26 = vpop.permute.xlu1 %1452 }
 0x38b   :  { %v1753_v55 = vmin.f32 %v1745_v14, 6.0  ;;  %v1752_v45 = vmin.f32 %v1744_v27, 6.0  ;;  %v1346_v27 = vmul.f32 %v3149_v5, %v3800_v61  ;;  %v1347_v14 = vmul.f32 %v3185_v46, %v3800_v61 }
 0x38d   :  { %v1902_v48 = vpack.c.bf16 %v1753_v55, %v1751_v0  ;;  %v1904_v31 = vpack.c.bf16 %v1752_v45, %v1750_v51  ;;  %v3801_v0 = vld [vmem:[#allocation11_spill] sm:$0xff] }
 0x38e   :  { %v3408_v28 = vpop.permute.xlu0 %1546  ;;  %v3410_v39 = vpop.permute.xlu1 %1500 }
 0x38f   :  { %1903 = vmatprep.subr.bf16.mxu0 %v1902_v48  ;;  %v3802_v48 = vld [vmem:[#allocation14_spill] sm:$0xff] }
 0x390   :  { %1905 = vmatpush1.bf16.msra.mxu0 %v1904_v31  ;;  %v1349_v31 = vmul.f32 %v3191_v21, %v3802_v48 }
 0x392   :  { %v3412_v11 = vpop.permute.xlu0 %1594  ;;  %v3414_v23 = vpop.permute.xlu1 %1548 }
 0x396   :  { %v3416_v9 = vpop.permute.xlu0 %1642  ;;  %v3418_v41 = vpop.permute.xlu1 %1596 }
 0x39a   :  { %v3420_v1 = vpop.permute.xlu0 %1690  ;;  %v3422_v30 = vpop.permute.xlu1 %1644 }
 0x39e   :  { %v1363_v20 = vpop.permute.xlu0 %1362  ;;  %v3424_v7 = vpop.permute.xlu1 %1692 }
 0x39f   :  { %v1368_v22 = vsel %vm507_vm10, %v1355_v10, %v1363_v20  ;;  %v1372_v54 = vsel %vm507_vm10, %v1363_v20, %v1355_v10 }
 0x3a0   :  { %v1378_v6 = vmul.f32 %v1372_v54, %v3798_v8  ;;  %v1379_v16 = vmul.f32 %v1368_v22, %v3798_v8 }
 0x3a2   :  { %v1386_v32 = vmul.f32 %v1378_v6, %v2654_v24  ;;  %v1387_v53 = vmul.f32 %v1379_v16, %v2614_v12  ;;  %v1411_v47 = vpop.permute.xlu0 %1410  ;;  %v1365_v29 = vpop.permute.xlu1 %1364 }
 0x3a3   :  { %v1416_v4 = vsel %vm584_vm13, %v1403_v56, %v1411_v47  ;;  %v1420_v42 = vsel %vm584_vm13, %v1411_v47, %v1403_v56  ;;  %v1369_v58 = vsel %vm507_vm10, %v1357_v40, %v1365_v29  ;;  %v1373_v10 = vsel %vm507_vm10, %v1365_v29, %v1357_v40  ;;  %v3803_v47 = vld [vmem:[#allocation18_spill] sm:$0xff] }
 0x3a4   :  { %v1426_v34 = vmul.f32 %v1420_v42, %v3799_v63  ;;  %v1427_v62 = vmul.f32 %v1416_v4, %v3799_v63  ;;  %v1380_v55 = vmul.f32 %v1373_v10, %v3801_v0  ;;  %v1381_v56 = vmul.f32 %v1369_v58, %v3801_v0  ;;  %v3804_v42 = vld [vmem:[#allocation16_spill] sm:$0xff] }
 0x3a5   :  { %v1348_v40 = vmul.f32 %v3155_v36, %v3802_v48  ;;  %v1394_v5 = vadd.f32 %v1386_v32, %v1346_v27  ;;  %v1395_v54 = vadd.f32 %v1387_v53, %v1347_v14 }
 0x3a6   :  { %v1434_v51 = vmul.f32 %v1426_v34, %v2640_v3  ;;  %v1435_v45 = vmul.f32 %v1427_v62, %v2596_v59  ;;  %v1459_v20 = vpop.permute.xlu0 %1458  ;;  %v1413_v22 = vpop.permute.xlu1 %1412  ;;  %v1388_v6 = vmul.f32 %v1380_v55, %v2654_v24  ;;  %v1389_v16 = vmul.f32 %v1381_v56, %v2614_v12 }
 0x3a7   :  { %v1464_v46 = vsel %vm661_vm14, %v1451_v43, %v1459_v20  ;;  %v1468_v8 = vsel %vm661_vm14, %v1459_v20, %v1451_v43  ;;  %v1417_v32 = vsel %vm584_vm13, %v3400_v57, %v1413_v22  ;;  %v1421_v53 = vsel %vm584_vm13, %v1413_v22, %v3400_v57 }
 0x3a8   :  { %v1474_v29 = vmul.f32 %v1468_v8, %v3803_v47  ;;  %v1475_v36 = vmul.f32 %v1464_v46, %v3803_v47  ;;  %v1442_v4 = vadd.f32 %v1434_v51, %v1394_v5  ;;  %v1443_v21 = vadd.f32 %v1435_v45, %v1395_v54  ;;  %v3805_v45 = vld [vmem:[#allocation19_spill] sm:$0xff] }
 0x3a9   :  { %v1428_v12 = vmul.f32 %v1421_v53, %v3804_v42  ;;  %v1429_v58 = vmul.f32 %v1417_v32, %v3804_v42  ;;  %v1396_v27 = vadd.f32 %v1388_v6, %v1348_v40  ;;  %v1397_v14 = vadd.f32 %v1389_v16, %v1349_v31 }
 0x3aa   :  { %v1482_v43 = vmul.f32 %v1474_v29, %v2668_v19  ;;  %v1483_v24 = vmul.f32 %v1475_v36, %v2635_v2  ;;  %v1507_v10 = vpop.permute.xlu0 %1506  ;;  %v1461_v63 = vpop.permute.xlu1 %1460 }
 0x3ab   :  { %v1512_v34 = vsel %vm738_vm15, %v3404_v13, %v1507_v10  ;;  %v1516_v62 = vsel %vm738_vm15, %v1507_v10, %v3404_v13  ;;  %v1465_v57 = vsel %vm661_vm14, %v3406_v26, %v1461_v63  ;;  %v1469_v61 = vsel %vm661_vm14, %v1461_v63, %v3406_v26 }
 0x3ac   :  { %v1436_v0 = vmul.f32 %v1428_v12, %v2640_v3  ;;  %v1437_v55 = vmul.f32 %v1429_v58, %v2596_v59  ;;  %v1522_v56 = vmul.f32 %v1516_v62, %v3763_v44  ;;  %v1523_v51 = vmul.f32 %v1512_v34, %v3763_v44  ;;  %v3806_v58 = vld [vmem:[#allocation28_spill] sm:$0xff] }
 0x3ad   :  { %v1476_v13 = vmul.f32 %v1469_v61, %v3805_v45  ;;  %v1477_v48 = vmul.f32 %v1465_v57, %v3805_v45  ;;  %v1490_v20 = vadd.f32 %v1482_v43, %v1442_v4  ;;  %v1491_v22 = vadd.f32 %v1483_v24, %v1443_v21 }
 0x3ae   :  { %v1555_v5 = vpop.permute.xlu0 %1554  ;;  %v1509_v54 = vpop.permute.xlu1 %1508  ;;  %v1444_v46 = vadd.f32 %v1436_v0, %v1396_v27  ;;  %v1445_v26 = vadd.f32 %v1437_v55, %v1397_v14  ;;  %v1530_v40 = vmul.f32 %v1522_v56, %v2617_v17  ;;  %v1531_v3 = vmul.f32 %v1523_v51, %v2617_v17 }
 0x3af   :  { %v1560_v59 = vsel %vm811_vm0, %v3408_v28, %v1555_v5  ;;  %v1564_v44 = vsel %vm811_vm0, %v1555_v5, %v3408_v28  ;;  %v1513_v31 = vsel %vm738_vm15, %v3410_v39, %v1509_v54  ;;  %v1517_v8 = vsel %vm738_vm15, %v1509_v54, %v3410_v39  ;;  %v3808_v54 = vld [vmem:[#allocation32_spill] sm:$0xff] }
 0x3b0   :  { %v1538_v6 = vadd.f32 %v1530_v40, %v1490_v20  ;;  %v1539_v16 = vadd.f32 %v1531_v3, %v1491_v22  ;;  %v1484_v47 = vmul.f32 %v1476_v13, %v2668_v19  ;;  %v1485_v29 = vmul.f32 %v1477_v48, %v2635_v2  ;;  %v3807_v20 = vld [vmem:[#allocation37_spill] sm:$0xff] }
 0x3b1   :  { %v1570_v36 = vmul.f32 %v1560_v59, %v3765_v38  ;;  %v1571_v4 = vmul.f32 %v1564_v44, %v3765_v38  ;;  %v1524_v28 = vmul.f32 %v1517_v8, %v3766_v52  ;;  %v1525_v21 = vmul.f32 %v1513_v31, %v3766_v52 }
 0x3b2   :  { %v1603_v32 = vpop.permute.xlu0 %1602  ;;  %v1557_v53 = vpop.permute.xlu1 %1556  ;;  %v1492_v34 = vadd.f32 %v1484_v47, %v1444_v46  ;;  %v1493_v62 = vadd.f32 %v1485_v29, %v1445_v26 }
 0x3b3   :  { %v1608_v39 = vsel %vm884_vm1, %v3412_v11, %v1603_v32  ;;  %v1612_v19 = vsel %vm884_vm1, %v1603_v32, %v3412_v11  ;;  %v1561_v2 = vsel %vm811_vm0, %v3414_v23, %v1557_v53  ;;  %v1565_v38 = vsel %vm811_vm0, %v1557_v53, %v3414_v23 }
 0x3b4   :  { %v1578_v52 = vmul.f32 %v1570_v36, %v2620_v49  ;;  %v1579_v43 = vmul.f32 %v1571_v4, %v2620_v49  ;;  %v1532_v24 = vmul.f32 %v1524_v28, %v2617_v17  ;;  %v1533_v42 = vmul.f32 %v1525_v21, %v2617_v17  ;;  %v3810_v36 = vld [vmem:[#allocation38_spill] sm:$0xff] }
 0x3b5   :  { %v1618_v12 = vmul.f32 %v1608_v39, %v3767_v25  ;;  %v1619_v11 = vmul.f32 %v1612_v19, %v3767_v25  ;;  %v1572_v10 = vmul.f32 %v1561_v2, %v3806_v58  ;;  %v1573_v63 = vmul.f32 %v1565_v38, %v3806_v58  ;;  %v3811_v58 = vld [vmem:[#allocation40_spill] sm:$0xff] }
 0x3b6   :  { %v1651_v57 = vpop.permute.xlu0 %1650  ;;  %v1605_v23 = vpop.permute.xlu1 %1604  ;;  %v1586_v61 = vadd.f32 %v1578_v52, %v1538_v6  ;;  %v1587_v27 = vadd.f32 %v1579_v43, %v1539_v16  ;;  %v1540_v51 = vadd.f32 %v1532_v24, %v1492_v34  ;;  %v1541_v45 = vadd.f32 %v1533_v42, %v1493_v62  ;;  %v3809_v16 = vld [vmem:[#allocation39_spill] sm:$0xff]  ;;  %v3812_v34 = vld [vmem:[#allocation22_spill] sm:$0xff] }
 0x3b7   :  { %v1626_v14 = vmul.f32 %v1618_v12, %v2789_v35  ;;  %v1627_v0 = vmul.f32 %v1619_v11, %v2645_v37  ;;  %v1656_v17 = vsel %vm961_vm4, %v3416_v9, %v1651_v57  ;;  %v1660_v25 = vsel %vm961_vm4, %v1651_v57, %v3416_v9 }
 0x3b8   :  { %v1609_v55 = vsel %vm884_vm1, %v3418_v41, %v1605_v23  ;;  %v1613_v56 = vsel %vm884_vm1, %v1605_v23, %v3418_v41  ;;  %v1580_v13 = vmul.f32 %v1572_v10, %v2620_v49  ;;  %v1581_v48 = vmul.f32 %v1573_v63, %v2620_v49 }
 0x3b9   :  { %v1666_v22 = vmul.f32 %v1656_v17, %v3807_v20  ;;  %v1667_v5 = vmul.f32 %v1660_v25, %v3807_v20  ;;  %v1620_v9 = vmul.f32 %v1609_v55, %v3808_v54  ;;  %v1621_v46 = vmul.f32 %v1613_v56, %v3808_v54 }
 0x3ba   :  { %v1699_v26 = vpop.permute.xlu0 %1698  ;;  %v1653_v40 = vpop.permute.xlu1 %1652  ;;  %v1634_v44 = vadd.f32 %v1626_v14, %v1586_v61  ;;  %v1635_v31 = vadd.f32 %v1627_v0, %v1587_v27  ;;  %v1588_v28 = vadd.f32 %v1580_v13, %v1540_v51  ;;  %v1589_v21 = vadd.f32 %v1581_v48, %v1541_v45  ;;  %v3813_v0 = vld [vmem:[#allocation33_spill] sm:$0xff]  ;;  %v3814_v48 = vld [vmem:[#allocation27_spill] sm:$0xff] }
 0x3bb   :  { %v1704_v41 = vsel %vm1038_vm6, %v3420_v1, %v1699_v26  ;;  %v1708_v3 = vsel %vm1038_vm6, %v1699_v26, %v3420_v1  ;;  %v1657_v49 = vsel %vm961_vm4, %v3422_v30, %v1653_v40  ;;  %v1661_v59 = vsel %vm961_vm4, %v1653_v40, %v3422_v30 }
 0x3bc   :  { %v1674_v8 = vmul.f32 %v1666_v22, %v2660_v15  ;;  %v1675_v6 = vmul.f32 %v1667_v5, %v2604_v60  ;;  %v1714_v47 = vmul.f32 %v1704_v41, %v3809_v16  ;;  %v1715_v29 = vmul.f32 %v1708_v3, %v3809_v16  ;;  %v3815_v22 = vld [vmem:[#allocation23_spill] sm:$0xff]  ;;  %v3816_v3 = vld [vmem:[#allocation21_spill] sm:$0xff]  ;;  %v3818_v16 = vld [vmem:[#allocation24_spill] sm:$0xff] }
 0x3bd   :  { %v1668_v1 = vmul.f32 %v1657_v49, %v3810_v36  ;;  %v1669_v4 = vmul.f32 %v1661_v59, %v3810_v36  ;;  %v1628_v32 = vmul.f32 %v1620_v9, %v2789_v35  ;;  %v1629_v30 = vmul.f32 %v1621_v46, %v2645_v37  ;;  %v1937_v46 = vld [vmem:[%s3615_s0 + $0x8] sm:$0xff] }
 0x3be   :  { %v1701_v53 = vpop.permute.xlu1 %1700  ;;  %v1682_v39 = vadd.f32 %v1674_v8, %v1634_v44  ;;  %v1683_v19 = vadd.f32 %v1675_v6, %v1635_v31  ;;  %v1722_v2 = vmul.f32 %v1714_v47, %v2793_v50  ;;  %v1723_v38 = vmul.f32 %v1715_v29, %v2671_v33  ;;  %v3817_v8 = vld [vmem:[#allocation35_spill] sm:$0xff] }
 0x3bf   :  { %v1676_v52 = vmul.f32 %v1668_v1, %v2660_v15  ;;  %v1677_v43 = vmul.f32 %v1669_v4, %v2604_v60  ;;  %v1705_v24 = vsel %vm1038_vm6, %v3424_v7, %v1701_v53  ;;  %v1709_v35 = vsel %vm1038_vm6, %v1701_v53, %v3424_v7 }
 0x3c0   :  { %v1730_v37 = vadd.f32 %v1722_v2, %v1682_v39  ;;  %v1731_v42 = vadd.f32 %v1723_v38, %v1683_v19  ;;  %v1636_v12 = vadd.f32 %v1628_v32, %v1588_v28  ;;  %v1637_v11 = vadd.f32 %v1629_v30, %v1589_v21 }
 0x3c1   :  { %v1716_v10 = vmul.f32 %v1705_v24, %v3811_v58  ;;  %v1717_v63 = vmul.f32 %v1709_v35, %v3811_v58 }
 0x3c2   :  { %v1738_v15 = vadd.f32 %v1730_v37, %v3812_v34  ;;  %v1739_v60 = vadd.f32 %v1731_v42, %v3812_v34  ;;  %v1684_v62 = vadd.f32 %v1676_v52, %v1636_v12  ;;  %v1685_v57 = vadd.f32 %v1677_v43, %v1637_v11 }
 0x3c3   :  { %v1724_v23 = vmul.f32 %v1716_v10, %v2793_v50  ;;  %v1725_v61 = vmul.f32 %v1717_v63, %v2671_v33  ;;  %v1936_v33 = vld [vmem:[%s3615_s0] sm:$0xff]  ;;  %s1938_s0 = scalar_lea.vmem %s1840_s9, 512 }
 0x3c4   :  { %v1746_v27 = vmax.f32 %v1738_v15, 0.0  ;;  %v1747_v14 = vmax.f32 %v1739_v60, 0.0  ;;  %p1939_p0 = scmp.ne.s32.totalorder %s1840_s9, %s1938_s0  ;;  %p1944_p2 = scmp.lt.s32.totalorder %s1938_s0, %s1938_s0 }
 0x3c5   :  { %v1732_v18 = vadd.f32 %v1724_v23, %v1684_v62  ;;  %v1733_v7 = vadd.f32 %v1725_v61, %v1685_v57 }
 0x3c6   :  { %v1755_v45 = vmin.f32 %v1747_v14, 6.0  ;;  %v1754_v13 = vmin.f32 %v1746_v27, 6.0  ;;  %p1945_p3 = por %p1944_p2, %p1943_p1 }
 0x3c7   :  { %v1740_v17 = vadd.f32 %v1732_v18, %v3813_v0  ;;  %v1741_v25 = vadd.f32 %v1733_v7, %v3813_v0 }
 0x3c8   :  { %p1946_p4 = pnand %p1945_p3, %p1939_p0 }
 0x3c9   :  { %v1748_v55 = vmax.f32 %v1740_v17, 0.0  ;;  %v1749_v56 = vmax.f32 %v1741_v25, 0.0 }
 0x3cb   :  { %v1146_v51 = vpop.permute.xlu0 %1145  ;;  %v1757_v50 = vmin.f32 %v1749_v56, 6.0  ;;  %v1756_v54 = vmin.f32 %v1748_v55, 6.0 }
 0x3cc   :  { %v1218_v20 = vadd.f32 %v3814_v48, %v1146_v51  ;;  %v1220_v5 = vadd.f32 %v3815_v22, %v1146_v51 }
 0x3cd   :  { %v1906_v40 = vpack.c.bf16 %v1757_v50, %v1755_v45  ;;  %v1908_v41 = vpack.c.bf16 %v1756_v54, %v1754_v13 }
 0x3ce   :  { %v1222_v9 = vadd.f32 %v1936_v33, %v1218_v20  ;;  %v1223_v26 = vadd.f32 %v1937_v46, %v1220_v5 }
 0x3cf   :  { %1907 = vmatprep.subr.bf16.mxu0 %v1906_v40 }
 0x3d0   :  { %1224 = vst [vmem:[#allocation2] sm:$0xff] %v1222_v9  ;;  %1225 = vst [vmem:[#allocation2 + $0x8] sm:$0xff] %v1223_v26  ;;  %1909 = vmatpush1.bf16.msra.mxu0 %v1908_v41 }
 0x3d3   :  { %1881 = vmatmul.mubr.msk.f32.vlgmr.msra.gmra.mrb[8].mxu0 %vm155_vm5, %v3816_v3 }
 0x4a6   :  { %v1824_v49 = vpop.f32.mrb[8].mxu0 }
 0x4a7   :  { %v1825_v59 = vadd.f32 %v1824_v49, %v1146_v51  ;;  %v1826_v44 = vpop.f32.mrb[9].mxu0 }
 0x4a8   :  { %v1827_v31 = vadd.f32 %v1826_v44, %v1146_v51 }
 0x4a9   :  { %v1829_v6 = vadd.f32 %v3817_v8, %v1825_v59 }
 0x4aa   :  { %v1830_v47 = vadd.f32 %v3818_v16, %v1827_v31 }
 0x4ab   :  { %1832 = vst [vmem:[#allocation2 + $0x10] sm:$0xff] %v1829_v6 }
 0x4ac   :  { %1833 = vst [vmem:[#allocation2 + $0x18] sm:$0xff] %v1830_v47 }
 0x4ad   :  { %1949 = shalt.err (!%p1946_p4)
}
 0x4ae   :  { %s1950_s3 = scalar_lea.hbm %s3621_s6, 512 }
 0x4af   :  { %p1951_p5 = scmp.ne.s32.totalorder %s3621_s6, %s1950_s3  ;;  %p1954_p6 = scmp.lt.u32.totalorder %s1950_s3, %s3621_s6 }
 0x4b1   :  { %p1956_p7 = pnand %p1954_p6, %p1951_p5 }
 0x4b3   :  { %1959 = shalt.err (!%p1956_p7)
}
 0x4b4   :  { %s1981_s20 = smov 256  }
 0x4b5   :  { %1845 = dma.vmem_to_hbm [thread:$0]  %s1840_s9, 512, %s3621_s6, [#allocation3], %s1981_s20, %s1981_s20, %s1967_s11  }
 0x4b6   :  { %1960 = dma.done.wait [#allocation3], 512  }
 0x4b7   :  { %1961 = vsyncadd [#allocation3], 4294966784 }
 0x4b8   :  { %1849 = vsyncpa [#allocation3], 1 }

</bundles_post_ra>
